<compile_context>
chip_gen: v7x
topology: tpu7x:2x2x1
jax: 0.10.0
libtpu: 0.0.40
codegen_flags: <defaults>
</compile_context>

<pallas_src>
import functools

import numpy as np
import jax
import jax.numpy as jnp
from jax.experimental import pallas as pl
from jax.experimental.pallas import tpu as pltpu


# --------------------------------------------------------------------------
# Pallas kernels
# --------------------------------------------------------------------------
def gru_seq_kernel(x_ref, wi_ref, wh_ref, bi_ref, bh_ref, h_out_ref, gi_scratch,
                   *, n_steps, batch):
    """Full GRU sequence in a single invocation.

    x_ref      : (T*B, E)  time-major inputs, flattened   (MXU dtype)
    wi_ref     : (E, 3H)   fused [W_ir | W_iz | W_in]     (MXU dtype)
    wh_ref     : (H, 3H)   fused [W_hr | W_hz | W_hn]     (MXU dtype)
    bi_ref     : (1, 3H)   fused input biases  (f32)
    bh_ref     : (1, 3H)   fused hidden biases (f32)
    h_out_ref  : (T*B, H)  hidden state for every step    (f32)
    gi_scratch : VMEM (T*B, 3H) f32 — hoisted input projections.
    """
    H = h_out_ref.shape[1]

    # Hoisted input projection for ALL time steps: one big MXU matmul.
    gi_scratch[...] = (
        jnp.dot(x_ref[...], wi_ref[...], preferred_element_type=jnp.float32)
        + bi_ref[...])

    def step(t, h):
        row = t * batch                                   # sublane-aligned (B % 8 == 0)
        gi = gi_scratch[pl.ds(row, batch), :]             # (B, 3H) f32
        wh = wh_ref[...]
        gh = (jnp.dot(h.astype(wh.dtype), wh,
                      preferred_element_type=jnp.float32) + bh_ref[...])
        r = jax.nn.sigmoid(gi[:, :H] + gh[:, :H])
        z = jax.nn.sigmoid(gi[:, H:2 * H] + gh[:, H:2 * H])
        n = jnp.tanh(gi[:, 2 * H:] + r * gh[:, 2 * H:])
        h_new = (1.0 - z) * n + z * h
        h_out_ref[pl.ds(row, batch), :] = h_new
        return h_new

    h0 = jnp.zeros((batch, H), jnp.float32)
    jax.lax.fori_loop(0, n_steps, step, h0, unroll=True)


def linear_kernel(x_ref, w_ref, b_ref, o_ref):
    o_ref[...] = (jnp.dot(x_ref[...], w_ref[...],
                          preferred_element_type=jnp.float32) + b_ref[...])


# --------------------------------------------------------------------------
# Wrappers
# --------------------------------------------------------------------------
def run_gru(x_flat, n_steps, batch, p, mxu_dtype):
    """x_flat: (T*B, E) time-major flattened. Returns hiddens (T*B, H) f32."""
    TB, E = x_flat.shape
    H = p["w_h"].shape[0]
    H3 = 3 * H
    kernel = functools.partial(gru_seq_kernel, n_steps=n_steps, batch=batch)
    return pl.pallas_call(
        kernel,
        out_shape=jax.ShapeDtypeStruct((TB, H), jnp.float32),
        grid=(1,),
        in_specs=[
            pl.BlockSpec((TB, E), lambda i: (0, 0)),
            pl.BlockSpec((E, H3), lambda i: (0, 0)),
            pl.BlockSpec((H, H3), lambda i: (0, 0)),
            pl.BlockSpec((1, H3), lambda i: (0, 0)),
            pl.BlockSpec((1, H3), lambda i: (0, 0)),
        ],
        out_specs=pl.BlockSpec((TB, H), lambda i: (0, 0)),
        scratch_shapes=[pltpu.VMEM((TB, H3), jnp.float32)],
        compiler_params=pltpu.CompilerParams(dimension_semantics=("arbitrary",)),
    )(x_flat, p["w_i"].astype(mxu_dtype), p["w_h"].astype(mxu_dtype),
      p["b_i"], p["b_h"])


def run_linear(x, w_t, b, mxu_dtype, tile_n=128):
    """x: (N, H), w_t: (H, V), b: (1, V) -> (N, V) f32.  Row-tiled, parallel grid."""
    N, H = x.shape
    V = w_t.shape[1]
    n_pad = ((N + tile_n - 1) // tile_n) * tile_n
    if n_pad != N:
        x = jnp.pad(x, ((0, n_pad - N), (0, 0)))
    out = pl.pallas_call(
        linear_kernel,
        out_shape=jax.ShapeDtypeStruct((n_pad, V), jnp.float32),
        grid=(n_pad // tile_n,),
        in_specs=[pl.BlockSpec((tile_n, H), lambda i: (i, 0)),
                  pl.BlockSpec((H, V), lambda i: (0, 0)),
                  pl.BlockSpec((1, V), lambda i: (0, 0))],
        out_specs=pl.BlockSpec((tile_n, V), lambda i: (i, 0)),
        compiler_params=pltpu.CompilerParams(
            dimension_semantics=("parallel",)),   # v7x: split row tiles over 2 TCs
    )(x.astype(mxu_dtype), w_t.astype(mxu_dtype), b)
    return out[:N]


def packed_indices(lengths, batch, batch_stride):
    """Flat (t*batch_stride + b) indices reproducing
    pack_padded_sequence(batch_first=True, sorted lengths) data ordering."""
    idx = []
    for t in range(int(max(lengths))):
        for b in range(batch):
            if lengths[b] > t:
                idx.append(t * batch_stride + b)
    return np.asarray(idx, dtype=np.int32)


def rnn_forward(features, captions, lengths, p, mxu_dtype=jnp.float32):
    """Equivalent of RNN.forward: (sum(lengths), vocab) logits in packed order."""
    B, T = captions.shape
    E = p["embedding"].shape[1]
    H = p["w_h"].shape[0]
    T1 = T + 1

    # Glue: embedding lookup + concat of the image feature as the first step.
    emb = jnp.take(p["embedding"], captions, axis=0)               # (B, T, E)
    inputs = jnp.concatenate([features[:, None, :], emb], axis=1)  # (B, T1, E)

    # Pad batch to a sublane multiple of 8 (lane/sublane-dense kernel shapes).
    b_pad = ((B + 7) // 8) * 8
    if b_pad != B:
        inputs = jnp.pad(inputs, ((0, b_pad - B), (0, 0), (0, 0)))

    # Time-major, flattened so the input projection is one big matmul.
    x_flat = (jnp.transpose(inputs, (1, 0, 2))
              .reshape(T1 * b_pad, E).astype(mxu_dtype))           # (T1*b_pad, E)

    hiddens = run_gru(x_flat, T1, b_pad, p, mxu_dtype)             # (T1*b_pad, H)

    # pack_padded_sequence: static gather into packed (time-major) order.
    idx = packed_indices(lengths, B, b_pad)
    packed = hiddens[jnp.asarray(idx)]                             # (total, H)

    return run_linear(packed, p["w_lin"], p["b_lin"], mxu_dtype)   # (total, V)


def pick_mxu_dtype():
    """bf16 MXU operands on v6e/v7x (f32 accumulate); f32 on v5e and older."""
    try:
        kind = jax.devices()[0].device_kind.lower()
    except Exception:
        return jnp.float32
    if any(v in kind for v in ("v2", "v3", "v4", "v5")):
        return jnp.float32
    return jnp.bfloat16


# --------------------------------------------------------------------------
# Pure-JAX reference (PyTorch GRU equations, f32 HIGHEST) for correctness
# --------------------------------------------------------------------------
def ref_forward(features, captions, lengths, p):
    HP = jax.lax.Precision.HIGHEST
    H = p["w_h"].shape[0]
    emb = jnp.take(p["embedding"], captions, axis=0)
    inputs = jnp.concatenate([features[:, None, :], emb], axis=1)
    inputs_tm = jnp.transpose(inputs, (1, 0, 2))
    B = inputs.shape[0]

    def step(h, x):
        gi = jnp.dot(x, p["w_i"], precision=HP) + p["b_i"]
        gh = jnp.dot(h, p["w_h"], precision=HP) + p["b_h"]
        r = jax.nn.sigmoid(gi[:, :H] + gh[:, :H])
        z = jax.nn.sigmoid(gi[:, H:2 * H] + gh[:, H:2 * H])
        n = jnp.tanh(gi[:, 2 * H:] + r * gh[:, 2 * H:])
        h_new = (1.0 - z) * n + z * h
        return h_new, h_new

    h0 = jnp.zeros((B, H), jnp.float32)
    _, hiddens_tm = jax.lax.scan(step, h0, inputs_tm)
    idx = packed_indices(lengths, B, B)
    packed = hiddens_tm.reshape((-1, H))[jnp.asarray(idx)]
    return jnp.dot(packed, p["w_lin"], precision=HP) + p["b_lin"]


# --------------------------------------------------------------------------
# Main
# --------------------------------------------------------------------------
if __name__ == "__main__":
    B, T = 8, 7                         # GRU sees T+1 = 8 steps (feature + caption)
    EMB, HID, VOCAB = 128, 128, 128     # lane-dense last dims
    lengths = [8, 7, 6, 5, 4, 3, 2, 2]  # sorted descending, max == T+1

    key = jax.random.PRNGKey(0)
    ks = jax.random.split(key, 10)
    s = 1.0 / np.sqrt(HID)

    def unif(k, shape):
        return jax.random.uniform(k, shape, jnp.float32, -s, s)

    params = {
        "embedding": jax.random.normal(ks[0], (VOCAB, EMB), jnp.float32),
        # Fused GRU weights, pre-transposed; columns ordered [r | z | n].
        "w_i": unif(ks[1], (EMB, 3 * HID)),
        "w_h": unif(ks[2], (HID, 3 * HID)),
        "b_i": unif(ks[3], (1, 3 * HID)),   # b_ih (r, z, n)
        "b_h": unif(ks[4], (1, 3 * HID)),   # b_hh (r, z, n)
        # Linear, pre-transposed: (H, V)
        "w_lin": unif(ks[5], (HID, VOCAB)),
        "b_lin": unif(ks[6], (1, VOCAB)),
    }

    features = jax.random.normal(ks[7], (B, EMB), jnp.float32)
    captions = jax.random.randint(ks[8], (B, T), 0, VOCAB, jnp.int32)

    mxu_dtype = pick_mxu_dtype()

    out = rnn_forward(features, captions, lengths, params, mxu_dtype)
    out = jax.block_until_ready(out)

    total = int(sum(lengths))
    assert out.shape == (total, VOCAB), out.shape

    ref = jax.block_until_ready(ref_forward(features, captions, lengths, params))
    tol = 8e-2 if mxu_dtype == jnp.bfloat16 else 1e-2
    np.testing.assert_allclose(np.asarray(out), np.asarray(ref), atol=tol, rtol=tol)

    print("KERNEL_OK")
</pallas_src>

<mosaic_0001>
module attributes {stable_mosaic.version = 11 : i64} {
  func.func @gru_seq_kernel(%arg0: i32, %arg1: memref<64x128xbf16, #tpu.memory_space<vmem>>, %arg2: memref<128x384xbf16, #tpu.memory_space<vmem>>, %arg3: memref<128x384xbf16, #tpu.memory_space<vmem>>, %arg4: memref<1x384xf32, #tpu.memory_space<vmem>>, %arg5: memref<1x384xf32, #tpu.memory_space<vmem>>, %arg6: memref<64x128xf32, #tpu.memory_space<vmem>>, %arg7: memref<64x384xf32, #tpu.memory_space<vmem>>) attributes {dimension_semantics = [#tpu.dimension_semantics<arbitrary>], iteration_bounds = array<i64: 1>, scalar_prefetch = 0 : i64, scratch_operands = 1 : i64, tpu.core_type = #tpu.core_type<tc>, window_params = [{pipeline_mode = #tpu.pipeline_mode<synchronous>, transform_indices = @transform_0, window_bounds = array<i64: 64, 128>}, {pipeline_mode = #tpu.pipeline_mode<synchronous>, transform_indices = @transform_1, window_bounds = array<i64: 128, 384>}, {pipeline_mode = #tpu.pipeline_mode<synchronous>, transform_indices = @transform_2, window_bounds = array<i64: 128, 384>}, {pipeline_mode = #tpu.pipeline_mode<synchronous>, transform_indices = @transform_3, window_bounds = array<i64: 1, 384>}, {pipeline_mode = #tpu.pipeline_mode<synchronous>, transform_indices = @transform_4, window_bounds = array<i64: 1, 384>}, {pipeline_mode = #tpu.pipeline_mode<synchronous>, transform_indices = @transform_5, window_bounds = array<i64: 64, 128>}]} {
    %c0 = arith.constant 0 : index
    %c0_0 = arith.constant 0 : index
    %0 = vector.load %arg1[%c0, %c0_0] : memref<64x128xbf16, #tpu.memory_space<vmem>>, vector<64x128xbf16>
    %c0_1 = arith.constant 0 : index
    %c0_2 = arith.constant 0 : index
    %1 = vector.load %arg2[%c0_1, %c0_2] : memref<128x384xbf16, #tpu.memory_space<vmem>>, vector<128x384xbf16>
    %cst = arith.constant dense<0.000000e+00> : vector<64x384xf32>
    %2 = tpu.matmul %0, %1, %cst {dimension_numbers = #tpu.dot_dimension_numbers<[1], [0], [0], [1], [0, 0, 1, 1], [], []>} : vector<64x128xbf16>, vector<128x384xbf16>, vector<64x384xf32> -> vector<64x384xf32>
    %c0_3 = arith.constant 0 : index
    %c0_4 = arith.constant 0 : index
    %3 = vector.load %arg4[%c0_3, %c0_4] : memref<1x384xf32, #tpu.memory_space<vmem>>, vector<1x384xf32>
    %4 = vector.broadcast %3 : vector<1x384xf32> to vector<64x384xf32>
    %5 = arith.addf %2, %4 : vector<64x384xf32>
    %c0_5 = arith.constant 0 : index
    %c0_6 = arith.constant 0 : index
    %6 = vector.load %arg7[%c0_5, %c0_6] : memref<64x384xf32, #tpu.memory_space<vmem>>, vector<64x384xf32>
    tpu.vector_store %arg7[%c0_5, %c0_6], %5 {strides = array<i32>} : memref<64x384xf32, #tpu.memory_space<vmem>>, vector<64x384xf32>,
    %cst_7 = arith.constant 0.000000e+00 : f32
    %7 = vector.broadcast %cst_7 : f32 to vector<8x128xf32>
    %c0_i32 = arith.constant 0 : i32
    %c8_i32 = arith.constant 8 : i32
    %8 = arith.muli %c0_i32, %c8_i32 : i32
    %9 = arith.index_cast %8 : i32 to index
    %c0_8 = arith.constant 0 : index
    %10 = vector.load %arg7[%9, %c0_8] : memref<64x384xf32, #tpu.memory_space<vmem>>, vector<8x384xf32>
    %c0_9 = arith.constant 0 : index
    %c0_10 = arith.constant 0 : index
    %11 = vector.load %arg3[%c0_9, %c0_10] : memref<128x384xbf16, #tpu.memory_space<vmem>>, vector<128x384xbf16>
    %12 = arith.truncf %7 : vector<8x128xf32> to vector<8x128xbf16>
    %cst_11 = arith.constant dense<0.000000e+00> : vector<8x384xf32>
    %13 = tpu.matmul %12, %11, %cst_11 {dimension_numbers = #tpu.dot_dimension_numbers<[1], [0], [0], [1], [0, 0, 1, 1], [], []>} : vector<8x128xbf16>, vector<128x384xbf16>, vector<8x384xf32> -> vector<8x384xf32>
    %c0_12 = arith.constant 0 : index
    %c0_13 = arith.constant 0 : index
    %14 = vector.load %arg5[%c0_12, %c0_13] : memref<1x384xf32, #tpu.memory_space<vmem>>, vector<1x384xf32>
    %15 = vector.broadcast %14 : vector<1x384xf32> to vector<8x384xf32>
    %16 = arith.addf %13, %15 : vector<8x384xf32>
    %17 = vector.extract_strided_slice %10 {offsets = [0, 0], sizes = [8, 128], strides = [1, 1]} : vector<8x384xf32> to vector<8x128xf32>
    %18 = vector.extract_strided_slice %16 {offsets = [0, 0], sizes = [8, 128], strides = [1, 1]} : vector<8x384xf32> to vector<8x128xf32>
    %19 = arith.addf %17, %18 : vector<8x128xf32>
    %20 = arith.negf %19 : vector<8x128xf32>
    %21 = math.exp %20 : vector<8x128xf32>
    %cst_14 = arith.constant 1.000000e+00 : f32
    %22 = vector.broadcast %cst_14 : f32 to vector<8x128xf32>
    %23 = arith.addf %22, %21 : vector<8x128xf32>
    %24 = arith.divf %22, %23 : vector<8x128xf32>
    %25 = vector.extract_strided_slice %10 {offsets = [0, 128], sizes = [8, 128], strides = [1, 1]} : vector<8x384xf32> to vector<8x128xf32>
    %26 = vector.extract_strided_slice %16 {offsets = [0, 128], sizes = [8, 128], strides = [1, 1]} : vector<8x384xf32> to vector<8x128xf32>
    %27 = arith.addf %25, %26 : vector<8x128xf32>
    %28 = arith.negf %27 : vector<8x128xf32>
    %29 = math.exp %28 : vector<8x128xf32>
    %cst_15 = arith.constant 1.000000e+00 : f32
    %30 = vector.broadcast %cst_15 : f32 to vector<8x128xf32>
    %31 = arith.addf %30, %29 : vector<8x128xf32>
    %32 = arith.divf %30, %31 : vector<8x128xf32>
    %33 = vector.extract_strided_slice %10 {offsets = [0, 256], sizes = [8, 128], strides = [1, 1]} : vector<8x384xf32> to vector<8x128xf32>
    %34 = vector.extract_strided_slice %16 {offsets = [0, 256], sizes = [8, 128], strides = [1, 1]} : vector<8x384xf32> to vector<8x128xf32>
    %35 = arith.mulf %24, %34 : vector<8x128xf32>
    %36 = arith.addf %33, %35 : vector<8x128xf32>
    %37 = math.tanh %36 : vector<8x128xf32>
    %cst_16 = arith.constant 1.000000e+00 : f32
    %38 = vector.broadcast %cst_16 : f32 to vector<8x128xf32>
    %39 = arith.subf %38, %32 : vector<8x128xf32>
    %40 = arith.mulf %39, %37 : vector<8x128xf32>
    %41 = arith.mulf %32, %7 : vector<8x128xf32>
    %42 = arith.addf %40, %41 : vector<8x128xf32>
    %43 = arith.index_cast %8 : i32 to index
    %c0_17 = arith.constant 0 : index
    %44 = vector.load %arg6[%43, %c0_17] : memref<64x128xf32, #tpu.memory_space<vmem>>, vector<8x128xf32>
    tpu.vector_store %arg6[%43, %c0_17], %42 {strides = array<i32>} : memref<64x128xf32, #tpu.memory_space<vmem>>, vector<8x128xf32>,
    %c1_i32 = arith.constant 1 : i32
    %c8_i32_18 = arith.constant 8 : i32
    %45 = arith.muli %c1_i32, %c8_i32_18 : i32
    %46 = arith.index_cast %45 : i32 to index
    %c0_19 = arith.constant 0 : index
    %47 = vector.load %arg7[%46, %c0_19] : memref<64x384xf32, #tpu.memory_space<vmem>>, vector<8x384xf32>
    %c0_20 = arith.constant 0 : index
    %c0_21 = arith.constant 0 : index
    %48 = vector.load %arg3[%c0_20, %c0_21] : memref<128x384xbf16, #tpu.memory_space<vmem>>, vector<128x384xbf16>
    %49 = arith.truncf %42 : vector<8x128xf32> to vector<8x128xbf16>
    %cst_22 = arith.constant dense<0.000000e+00> : vector<8x384xf32>
    %50 = tpu.matmul %49, %48, %cst_22 {dimension_numbers = #tpu.dot_dimension_numbers<[1], [0], [0], [1], [0, 0, 1, 1], [], []>} : vector<8x128xbf16>, vector<128x384xbf16>, vector<8x384xf32> -> vector<8x384xf32>
    %c0_23 = arith.constant 0 : index
    %c0_24 = arith.constant 0 : index
    %51 = vector.load %arg5[%c0_23, %c0_24] : memref<1x384xf32, #tpu.memory_space<vmem>>, vector<1x384xf32>
    %52 = vector.broadcast %51 : vector<1x384xf32> to vector<8x384xf32>
    %53 = arith.addf %50, %52 : vector<8x384xf32>
    %54 = vector.extract_strided_slice %47 {offsets = [0, 0], sizes = [8, 128], strides = [1, 1]} : vector<8x384xf32> to vector<8x128xf32>
    %55 = vector.extract_strided_slice %53 {offsets = [0, 0], sizes = [8, 128], strides = [1, 1]} : vector<8x384xf32> to vector<8x128xf32>
    %56 = arith.addf %54, %55 : vector<8x128xf32>
    %57 = arith.negf %56 : vector<8x128xf32>
    %58 = math.exp %57 : vector<8x128xf32>
    %cst_25 = arith.constant 1.000000e+00 : f32
    %59 = vector.broadcast %cst_25 : f32 to vector<8x128xf32>
    %60 = arith.addf %59, %58 : vector<8x128xf32>
    %61 = arith.divf %59, %60 : vector<8x128xf32>
    %62 = vector.extract_strided_slice %47 {offsets = [0, 128], sizes = [8, 128], strides = [1, 1]} : vector<8x384xf32> to vector<8x128xf32>
    %63 = vector.extract_strided_slice %53 {offsets = [0, 128], sizes = [8, 128], strides = [1, 1]} : vector<8x384xf32> to vector<8x128xf32>
    %64 = arith.addf %62, %63 : vector<8x128xf32>
    %65 = arith.negf %64 : vector<8x128xf32>
    %66 = math.exp %65 : vector<8x128xf32>
    %cst_26 = arith.constant 1.000000e+00 : f32
    %67 = vector.broadcast %cst_26 : f32 to vector<8x128xf32>
    %68 = arith.addf %67, %66 : vector<8x128xf32>
    %69 = arith.divf %67, %68 : vector<8x128xf32>
    %70 = vector.extract_strided_slice %47 {offsets = [0, 256], sizes = [8, 128], strides = [1, 1]} : vector<8x384xf32> to vector<8x128xf32>
    %71 = vector.extract_strided_slice %53 {offsets = [0, 256], sizes = [8, 128], strides = [1, 1]} : vector<8x384xf32> to vector<8x128xf32>
    %72 = arith.mulf %61, %71 : vector<8x128xf32>
    %73 = arith.addf %70, %72 : vector<8x128xf32>
    %74 = math.tanh %73 : vector<8x128xf32>
    %cst_27 = arith.constant 1.000000e+00 : f32
    %75 = vector.broadcast %cst_27 : f32 to vector<8x128xf32>
    %76 = arith.subf %75, %69 : vector<8x128xf32>
    %77 = arith.mulf %76, %74 : vector<8x128xf32>
    %78 = arith.mulf %69, %42 : vector<8x128xf32>
    %79 = arith.addf %77, %78 : vector<8x128xf32>
    %80 = arith.index_cast %45 : i32 to index
    %c0_28 = arith.constant 0 : index
    %81 = vector.load %arg6[%80, %c0_28] : memref<64x128xf32, #tpu.memory_space<vmem>>, vector<8x128xf32>
    tpu.vector_store %arg6[%80, %c0_28], %79 {strides = array<i32>} : memref<64x128xf32, #tpu.memory_space<vmem>>, vector<8x128xf32>,
    %c2_i32 = arith.constant 2 : i32
    %c8_i32_29 = arith.constant 8 : i32
    %82 = arith.muli %c2_i32, %c8_i32_29 : i32
    %83 = arith.index_cast %82 : i32 to index
    %c0_30 = arith.constant 0 : index
    %84 = vector.load %arg7[%83, %c0_30] : memref<64x384xf32, #tpu.memory_space<vmem>>, vector<8x384xf32>
    %c0_31 = arith.constant 0 : index
    %c0_32 = arith.constant 0 : index
    %85 = vector.load %arg3[%c0_31, %c0_32] : memref<128x384xbf16, #tpu.memory_space<vmem>>, vector<128x384xbf16>
    %86 = arith.truncf %79 : vector<8x128xf32> to vector<8x128xbf16>
    %cst_33 = arith.constant dense<0.000000e+00> : vector<8x384xf32>
    %87 = tpu.matmul %86, %85, %cst_33 {dimension_numbers = #tpu.dot_dimension_numbers<[1], [0], [0], [1], [0, 0, 1, 1], [], []>} : vector<8x128xbf16>, vector<128x384xbf16>, vector<8x384xf32> -> vector<8x384xf32>
    %c0_34 = arith.constant 0 : index
    %c0_35 = arith.constant 0 : index
    %88 = vector.load %arg5[%c0_34, %c0_35] : memref<1x384xf32, #tpu.memory_space<vmem>>, vector<1x384xf32>
    %89 = vector.broadcast %88 : vector<1x384xf32> to vector<8x384xf32>
    %90 = arith.addf %87, %89 : vector<8x384xf32>
    %91 = vector.extract_strided_slice %84 {offsets = [0, 0], sizes = [8, 128], strides = [1, 1]} : vector<8x384xf32> to vector<8x128xf32>
    %92 = vector.extract_strided_slice %90 {offsets = [0, 0], sizes = [8, 128], strides = [1, 1]} : vector<8x384xf32> to vector<8x128xf32>
    %93 = arith.addf %91, %92 : vector<8x128xf32>
    %94 = arith.negf %93 : vector<8x128xf32>
    %95 = math.exp %94 : vector<8x128xf32>
    %cst_36 = arith.constant 1.000000e+00 : f32
    %96 = vector.broadcast %cst_36 : f32 to vector<8x128xf32>
    %97 = arith.addf %96, %95 : vector<8x128xf32>
    %98 = arith.divf %96, %97 : vector<8x128xf32>
    %99 = vector.extract_strided_slice %84 {offsets = [0, 128], sizes = [8, 128], strides = [1, 1]} : vector<8x384xf32> to vector<8x128xf32>
    %100 = vector.extract_strided_slice %90 {offsets = [0, 128], sizes = [8, 128], strides = [1, 1]} : vector<8x384xf32> to vector<8x128xf32>
    %101 = arith.addf %99, %100 : vector<8x128xf32>
    %102 = arith.negf %101 : vector<8x128xf32>
    %103 = math.exp %102 : vector<8x128xf32>
    %cst_37 = arith.constant 1.000000e+00 : f32
    %104 = vector.broadcast %cst_37 : f32 to vector<8x128xf32>
    %105 = arith.addf %104, %103 : vector<8x128xf32>
    %106 = arith.divf %104, %105 : vector<8x128xf32>
    %107 = vector.extract_strided_slice %84 {offsets = [0, 256], sizes = [8, 128], strides = [1, 1]} : vector<8x384xf32> to vector<8x128xf32>
    %108 = vector.extract_strided_slice %90 {offsets = [0, 256], sizes = [8, 128], strides = [1, 1]} : vector<8x384xf32> to vector<8x128xf32>
    %109 = arith.mulf %98, %108 : vector<8x128xf32>
    %110 = arith.addf %107, %109 : vector<8x128xf32>
    %111 = math.tanh %110 : vector<8x128xf32>
    %cst_38 = arith.constant 1.000000e+00 : f32
    %112 = vector.broadcast %cst_38 : f32 to vector<8x128xf32>
    %113 = arith.subf %112, %106 : vector<8x128xf32>
    %114 = arith.mulf %113, %111 : vector<8x128xf32>
    %115 = arith.mulf %106, %79 : vector<8x128xf32>
    %116 = arith.addf %114, %115 : vector<8x128xf32>
    %117 = arith.index_cast %82 : i32 to index
    %c0_39 = arith.constant 0 : index
    %118 = vector.load %arg6[%117, %c0_39] : memref<64x128xf32, #tpu.memory_space<vmem>>, vector<8x128xf32>
    tpu.vector_store %arg6[%117, %c0_39], %116 {strides = array<i32>} : memref<64x128xf32, #tpu.memory_space<vmem>>, vector<8x128xf32>,
    %c3_i32 = arith.constant 3 : i32
    %c8_i32_40 = arith.constant 8 : i32
    %119 = arith.muli %c3_i32, %c8_i32_40 : i32
    %120 = arith.index_cast %119 : i32 to index
    %c0_41 = arith.constant 0 : index
    %121 = vector.load %arg7[%120, %c0_41] : memref<64x384xf32, #tpu.memory_space<vmem>>, vector<8x384xf32>
    %c0_42 = arith.constant 0 : index
    %c0_43 = arith.constant 0 : index
    %122 = vector.load %arg3[%c0_42, %c0_43] : memref<128x384xbf16, #tpu.memory_space<vmem>>, vector<128x384xbf16>
    %123 = arith.truncf %116 : vector<8x128xf32> to vector<8x128xbf16>
    %cst_44 = arith.constant dense<0.000000e+00> : vector<8x384xf32>
    %124 = tpu.matmul %123, %122, %cst_44 {dimension_numbers = #tpu.dot_dimension_numbers<[1], [0], [0], [1], [0, 0, 1, 1], [], []>} : vector<8x128xbf16>, vector<128x384xbf16>, vector<8x384xf32> -> vector<8x384xf32>
    %c0_45 = arith.constant 0 : index
    %c0_46 = arith.constant 0 : index
    %125 = vector.load %arg5[%c0_45, %c0_46] : memref<1x384xf32, #tpu.memory_space<vmem>>, vector<1x384xf32>
    %126 = vector.broadcast %125 : vector<1x384xf32> to vector<8x384xf32>
    %127 = arith.addf %124, %126 : vector<8x384xf32>
    %128 = vector.extract_strided_slice %121 {offsets = [0, 0], sizes = [8, 128], strides = [1, 1]} : vector<8x384xf32> to vector<8x128xf32>
    %129 = vector.extract_strided_slice %127 {offsets = [0, 0], sizes = [8, 128], strides = [1, 1]} : vector<8x384xf32> to vector<8x128xf32>
    %130 = arith.addf %128, %129 : vector<8x128xf32>
    %131 = arith.negf %130 : vector<8x128xf32>
    %132 = math.exp %131 : vector<8x128xf32>
    %cst_47 = arith.constant 1.000000e+00 : f32
    %133 = vector.broadcast %cst_47 : f32 to vector<8x128xf32>
    %134 = arith.addf %133, %132 : vector<8x128xf32>
    %135 = arith.divf %133, %134 : vector<8x128xf32>
    %136 = vector.extract_strided_slice %121 {offsets = [0, 128], sizes = [8, 128], strides = [1, 1]} : vector<8x384xf32> to vector<8x128xf32>
    %137 = vector.extract_strided_slice %127 {offsets = [0, 128], sizes = [8, 128], strides = [1, 1]} : vector<8x384xf32> to vector<8x128xf32>
    %138 = arith.addf %136, %137 : vector<8x128xf32>
    %139 = arith.negf %138 : vector<8x128xf32>
    %140 = math.exp %139 : vector<8x128xf32>
    %cst_48 = arith.constant 1.000000e+00 : f32
    %141 = vector.broadcast %cst_48 : f32 to vector<8x128xf32>
    %142 = arith.addf %141, %140 : vector<8x128xf32>
    %143 = arith.divf %141, %142 : vector<8x128xf32>
    %144 = vector.extract_strided_slice %121 {offsets = [0, 256], sizes = [8, 128], strides = [1, 1]} : vector<8x384xf32> to vector<8x128xf32>
    %145 = vector.extract_strided_slice %127 {offsets = [0, 256], sizes = [8, 128], strides = [1, 1]} : vector<8x384xf32> to vector<8x128xf32>
    %146 = arith.mulf %135, %145 : vector<8x128xf32>
    %147 = arith.addf %144, %146 : vector<8x128xf32>
    %148 = math.tanh %147 : vector<8x128xf32>
    %cst_49 = arith.constant 1.000000e+00 : f32
    %149 = vector.broadcast %cst_49 : f32 to vector<8x128xf32>
    %150 = arith.subf %149, %143 : vector<8x128xf32>
    %151 = arith.mulf %150, %148 : vector<8x128xf32>
    %152 = arith.mulf %143, %116 : vector<8x128xf32>
    %153 = arith.addf %151, %152 : vector<8x128xf32>
    %154 = arith.index_cast %119 : i32 to index
    %c0_50 = arith.constant 0 : index
    %155 = vector.load %arg6[%154, %c0_50] : memref<64x128xf32, #tpu.memory_space<vmem>>, vector<8x128xf32>
    tpu.vector_store %arg6[%154, %c0_50], %153 {strides = array<i32>} : memref<64x128xf32, #tpu.memory_space<vmem>>, vector<8x128xf32>,
    %c4_i32 = arith.constant 4 : i32
    %c8_i32_51 = arith.constant 8 : i32
    %156 = arith.muli %c4_i32, %c8_i32_51 : i32
    %157 = arith.index_cast %156 : i32 to index
    %c0_52 = arith.constant 0 : index
    %158 = vector.load %arg7[%157, %c0_52] : memref<64x384xf32, #tpu.memory_space<vmem>>, vector<8x384xf32>
    %c0_53 = arith.constant 0 : index
    %c0_54 = arith.constant 0 : index
    %159 = vector.load %arg3[%c0_53, %c0_54] : memref<128x384xbf16, #tpu.memory_space<vmem>>, vector<128x384xbf16>
    %160 = arith.truncf %153 : vector<8x128xf32> to vector<8x128xbf16>
    %cst_55 = arith.constant dense<0.000000e+00> : vector<8x384xf32>
    %161 = tpu.matmul %160, %159, %cst_55 {dimension_numbers = #tpu.dot_dimension_numbers<[1], [0], [0], [1], [0, 0, 1, 1], [], []>} : vector<8x128xbf16>, vector<128x384xbf16>, vector<8x384xf32> -> vector<8x384xf32>
    %c0_56 = arith.constant 0 : index
    %c0_57 = arith.constant 0 : index
    %162 = vector.load %arg5[%c0_56, %c0_57] : memref<1x384xf32, #tpu.memory_space<vmem>>, vector<1x384xf32>
    %163 = vector.broadcast %162 : vector<1x384xf32> to vector<8x384xf32>
    %164 = arith.addf %161, %163 : vector<8x384xf32>
    %165 = vector.extract_strided_slice %158 {offsets = [0, 0], sizes = [8, 128], strides = [1, 1]} : vector<8x384xf32> to vector<8x128xf32>
    %166 = vector.extract_strided_slice %164 {offsets = [0, 0], sizes = [8, 128], strides = [1, 1]} : vector<8x384xf32> to vector<8x128xf32>
    %167 = arith.addf %165, %166 : vector<8x128xf32>
    %168 = arith.negf %167 : vector<8x128xf32>
    %169 = math.exp %168 : vector<8x128xf32>
    %cst_58 = arith.constant 1.000000e+00 : f32
    %170 = vector.broadcast %cst_58 : f32 to vector<8x128xf32>
    %171 = arith.addf %170, %169 : vector<8x128xf32>
    %172 = arith.divf %170, %171 : vector<8x128xf32>
    %173 = vector.extract_strided_slice %158 {offsets = [0, 128], sizes = [8, 128], strides = [1, 1]} : vector<8x384xf32> to vector<8x128xf32>
    %174 = vector.extract_strided_slice %164 {offsets = [0, 128], sizes = [8, 128], strides = [1, 1]} : vector<8x384xf32> to vector<8x128xf32>
    %175 = arith.addf %173, %174 : vector<8x128xf32>
    %176 = arith.negf %175 : vector<8x128xf32>
    %177 = math.exp %176 : vector<8x128xf32>
    %cst_59 = arith.constant 1.000000e+00 : f32
    %178 = vector.broadcast %cst_59 : f32 to vector<8x128xf32>
    %179 = arith.addf %178, %177 : vector<8x128xf32>
    %180 = arith.divf %178, %179 : vector<8x128xf32>
    %181 = vector.extract_strided_slice %158 {offsets = [0, 256], sizes = [8, 128], strides = [1, 1]} : vector<8x384xf32> to vector<8x128xf32>
    %182 = vector.extract_strided_slice %164 {offsets = [0, 256], sizes = [8, 128], strides = [1, 1]} : vector<8x384xf32> to vector<8x128xf32>
    %183 = arith.mulf %172, %182 : vector<8x128xf32>
    %184 = arith.addf %181, %183 : vector<8x128xf32>
    %185 = math.tanh %184 : vector<8x128xf32>
    %cst_60 = arith.constant 1.000000e+00 : f32
    %186 = vector.broadcast %cst_60 : f32 to vector<8x128xf32>
    %187 = arith.subf %186, %180 : vector<8x128xf32>
    %188 = arith.mulf %187, %185 : vector<8x128xf32>
    %189 = arith.mulf %180, %153 : vector<8x128xf32>
    %190 = arith.addf %188, %189 : vector<8x128xf32>
    %191 = arith.index_cast %156 : i32 to index
    %c0_61 = arith.constant 0 : index
    %192 = vector.load %arg6[%191, %c0_61] : memref<64x128xf32, #tpu.memory_space<vmem>>, vector<8x128xf32>
    tpu.vector_store %arg6[%191, %c0_61], %190 {strides = array<i32>} : memref<64x128xf32, #tpu.memory_space<vmem>>, vector<8x128xf32>,
    %c5_i32 = arith.constant 5 : i32
    %c8_i32_62 = arith.constant 8 : i32
    %193 = arith.muli %c5_i32, %c8_i32_62 : i32
    %194 = arith.index_cast %193 : i32 to index
    %c0_63 = arith.constant 0 : index
    %195 = vector.load %arg7[%194, %c0_63] : memref<64x384xf32, #tpu.memory_space<vmem>>, vector<8x384xf32>
    %c0_64 = arith.constant 0 : index
    %c0_65 = arith.constant 0 : index
    %196 = vector.load %arg3[%c0_64, %c0_65] : memref<128x384xbf16, #tpu.memory_space<vmem>>, vector<128x384xbf16>
    %197 = arith.truncf %190 : vector<8x128xf32> to vector<8x128xbf16>
    %cst_66 = arith.constant dense<0.000000e+00> : vector<8x384xf32>
    %198 = tpu.matmul %197, %196, %cst_66 {dimension_numbers = #tpu.dot_dimension_numbers<[1], [0], [0], [1], [0, 0, 1, 1], [], []>} : vector<8x128xbf16>, vector<128x384xbf16>, vector<8x384xf32> -> vector<8x384xf32>
    %c0_67 = arith.constant 0 : index
    %c0_68 = arith.constant 0 : index
    %199 = vector.load %arg5[%c0_67, %c0_68] : memref<1x384xf32, #tpu.memory_space<vmem>>, vector<1x384xf32>
    %200 = vector.broadcast %199 : vector<1x384xf32> to vector<8x384xf32>
    %201 = arith.addf %198, %200 : vector<8x384xf32>
    %202 = vector.extract_strided_slice %195 {offsets = [0, 0], sizes = [8, 128], strides = [1, 1]} : vector<8x384xf32> to vector<8x128xf32>
    %203 = vector.extract_strided_slice %201 {offsets = [0, 0], sizes = [8, 128], strides = [1, 1]} : vector<8x384xf32> to vector<8x128xf32>
    %204 = arith.addf %202, %203 : vector<8x128xf32>
    %205 = arith.negf %204 : vector<8x128xf32>
    %206 = math.exp %205 : vector<8x128xf32>
    %cst_69 = arith.constant 1.000000e+00 : f32
    %207 = vector.broadcast %cst_69 : f32 to vector<8x128xf32>
    %208 = arith.addf %207, %206 : vector<8x128xf32>
    %209 = arith.divf %207, %208 : vector<8x128xf32>
    %210 = vector.extract_strided_slice %195 {offsets = [0, 128], sizes = [8, 128], strides = [1, 1]} : vector<8x384xf32> to vector<8x128xf32>
    %211 = vector.extract_strided_slice %201 {offsets = [0, 128], sizes = [8, 128], strides = [1, 1]} : vector<8x384xf32> to vector<8x128xf32>
    %212 = arith.addf %210, %211 : vector<8x128xf32>
    %213 = arith.negf %212 : vector<8x128xf32>
    %214 = math.exp %213 : vector<8x128xf32>
    %cst_70 = arith.constant 1.000000e+00 : f32
    %215 = vector.broadcast %cst_70 : f32 to vector<8x128xf32>
    %216 = arith.addf %215, %214 : vector<8x128xf32>
    %217 = arith.divf %215, %216 : vector<8x128xf32>
    %218 = vector.extract_strided_slice %195 {offsets = [0, 256], sizes = [8, 128], strides = [1, 1]} : vector<8x384xf32> to vector<8x128xf32>
    %219 = vector.extract_strided_slice %201 {offsets = [0, 256], sizes = [8, 128], strides = [1, 1]} : vector<8x384xf32> to vector<8x128xf32>
    %220 = arith.mulf %209, %219 : vector<8x128xf32>
    %221 = arith.addf %218, %220 : vector<8x128xf32>
    %222 = math.tanh %221 : vector<8x128xf32>
    %cst_71 = arith.constant 1.000000e+00 : f32
    %223 = vector.broadcast %cst_71 : f32 to vector<8x128xf32>
    %224 = arith.subf %223, %217 : vector<8x128xf32>
    %225 = arith.mulf %224, %222 : vector<8x128xf32>
    %226 = arith.mulf %217, %190 : vector<8x128xf32>
    %227 = arith.addf %225, %226 : vector<8x128xf32>
    %228 = arith.index_cast %193 : i32 to index
    %c0_72 = arith.constant 0 : index
    %229 = vector.load %arg6[%228, %c0_72] : memref<64x128xf32, #tpu.memory_space<vmem>>, vector<8x128xf32>
    tpu.vector_store %arg6[%228, %c0_72], %227 {strides = array<i32>} : memref<64x128xf32, #tpu.memory_space<vmem>>, vector<8x128xf32>,
    %c6_i32 = arith.constant 6 : i32
    %c8_i32_73 = arith.constant 8 : i32
    %230 = arith.muli %c6_i32, %c8_i32_73 : i32
    %231 = arith.index_cast %230 : i32 to index
    %c0_74 = arith.constant 0 : index
    %232 = vector.load %arg7[%231, %c0_74] : memref<64x384xf32, #tpu.memory_space<vmem>>, vector<8x384xf32>
    %c0_75 = arith.constant 0 : index
    %c0_76 = arith.constant 0 : index
    %233 = vector.load %arg3[%c0_75, %c0_76] : memref<128x384xbf16, #tpu.memory_space<vmem>>, vector<128x384xbf16>
    %234 = arith.truncf %227 : vector<8x128xf32> to vector<8x128xbf16>
    %cst_77 = arith.constant dense<0.000000e+00> : vector<8x384xf32>
    %235 = tpu.matmul %234, %233, %cst_77 {dimension_numbers = #tpu.dot_dimension_numbers<[1], [0], [0], [1], [0, 0, 1, 1], [], []>} : vector<8x128xbf16>, vector<128x384xbf16>, vector<8x384xf32> -> vector<8x384xf32>
    %c0_78 = arith.constant 0 : index
    %c0_79 = arith.constant 0 : index
    %236 = vector.load %arg5[%c0_78, %c0_79] : memref<1x384xf32, #tpu.memory_space<vmem>>, vector<1x384xf32>
    %237 = vector.broadcast %236 : vector<1x384xf32> to vector<8x384xf32>
    %238 = arith.addf %235, %237 : vector<8x384xf32>
    %239 = vector.extract_strided_slice %232 {offsets = [0, 0], sizes = [8, 128], strides = [1, 1]} : vector<8x384xf32> to vector<8x128xf32>
    %240 = vector.extract_strided_slice %238 {offsets = [0, 0], sizes = [8, 128], strides = [1, 1]} : vector<8x384xf32> to vector<8x128xf32>
    %241 = arith.addf %239, %240 : vector<8x128xf32>
    %242 = arith.negf %241 : vector<8x128xf32>
    %243 = math.exp %242 : vector<8x128xf32>
    %cst_80 = arith.constant 1.000000e+00 : f32
    %244 = vector.broadcast %cst_80 : f32 to vector<8x128xf32>
    %245 = arith.addf %244, %243 : vector<8x128xf32>
    %246 = arith.divf %244, %245 : vector<8x128xf32>
    %247 = vector.extract_strided_slice %232 {offsets = [0, 128], sizes = [8, 128], strides = [1, 1]} : vector<8x384xf32> to vector<8x128xf32>
    %248 = vector.extract_strided_slice %238 {offsets = [0, 128], sizes = [8, 128], strides = [1, 1]} : vector<8x384xf32> to vector<8x128xf32>
    %249 = arith.addf %247, %248 : vector<8x128xf32>
    %250 = arith.negf %249 : vector<8x128xf32>
    %251 = math.exp %250 : vector<8x128xf32>
    %cst_81 = arith.constant 1.000000e+00 : f32
    %252 = vector.broadcast %cst_81 : f32 to vector<8x128xf32>
    %253 = arith.addf %252, %251 : vector<8x128xf32>
    %254 = arith.divf %252, %253 : vector<8x128xf32>
    %255 = vector.extract_strided_slice %232 {offsets = [0, 256], sizes = [8, 128], strides = [1, 1]} : vector<8x384xf32> to vector<8x128xf32>
    %256 = vector.extract_strided_slice %238 {offsets = [0, 256], sizes = [8, 128], strides = [1, 1]} : vector<8x384xf32> to vector<8x128xf32>
    %257 = arith.mulf %246, %256 : vector<8x128xf32>
    %258 = arith.addf %255, %257 : vector<8x128xf32>
    %259 = math.tanh %258 : vector<8x128xf32>
    %cst_82 = arith.constant 1.000000e+00 : f32
    %260 = vector.broadcast %cst_82 : f32 to vector<8x128xf32>
    %261 = arith.subf %260, %254 : vector<8x128xf32>
    %262 = arith.mulf %261, %259 : vector<8x128xf32>
    %263 = arith.mulf %254, %227 : vector<8x128xf32>
    %264 = arith.addf %262, %263 : vector<8x128xf32>
    %265 = arith.index_cast %230 : i32 to index
    %c0_83 = arith.constant 0 : index
    %266 = vector.load %arg6[%265, %c0_83] : memref<64x128xf32, #tpu.memory_space<vmem>>, vector<8x128xf32>
    tpu.vector_store %arg6[%265, %c0_83], %264 {strides = array<i32>} : memref<64x128xf32, #tpu.memory_space<vmem>>, vector<8x128xf32>,
    %c7_i32 = arith.constant 7 : i32
    %c8_i32_84 = arith.constant 8 : i32
    %267 = arith.muli %c7_i32, %c8_i32_84 : i32
    %268 = arith.index_cast %267 : i32 to index
    %c0_85 = arith.constant 0 : index
    %269 = vector.load %arg7[%268, %c0_85] : memref<64x384xf32, #tpu.memory_space<vmem>>, vector<8x384xf32>
    %c0_86 = arith.constant 0 : index
    %c0_87 = arith.constant 0 : index
    %270 = vector.load %arg3[%c0_86, %c0_87] : memref<128x384xbf16, #tpu.memory_space<vmem>>, vector<128x384xbf16>
    %271 = arith.truncf %264 : vector<8x128xf32> to vector<8x128xbf16>
    %cst_88 = arith.constant dense<0.000000e+00> : vector<8x384xf32>
    %272 = tpu.matmul %271, %270, %cst_88 {dimension_numbers = #tpu.dot_dimension_numbers<[1], [0], [0], [1], [0, 0, 1, 1], [], []>} : vector<8x128xbf16>, vector<128x384xbf16>, vector<8x384xf32> -> vector<8x384xf32>
    %c0_89 = arith.constant 0 : index
    %c0_90 = arith.constant 0 : index
    %273 = vector.load %arg5[%c0_89, %c0_90] : memref<1x384xf32, #tpu.memory_space<vmem>>, vector<1x384xf32>
    %274 = vector.broadcast %273 : vector<1x384xf32> to vector<8x384xf32>
    %275 = arith.addf %272, %274 : vector<8x384xf32>
    %276 = vector.extract_strided_slice %269 {offsets = [0, 0], sizes = [8, 128], strides = [1, 1]} : vector<8x384xf32> to vector<8x128xf32>
    %277 = vector.extract_strided_slice %275 {offsets = [0, 0], sizes = [8, 128], strides = [1, 1]} : vector<8x384xf32> to vector<8x128xf32>
    %278 = arith.addf %276, %277 : vector<8x128xf32>
    %279 = arith.negf %278 : vector<8x128xf32>
    %280 = math.exp %279 : vector<8x128xf32>
    %cst_91 = arith.constant 1.000000e+00 : f32
    %281 = vector.broadcast %cst_91 : f32 to vector<8x128xf32>
    %282 = arith.addf %281, %280 : vector<8x128xf32>
    %283 = arith.divf %281, %282 : vector<8x128xf32>
    %284 = vector.extract_strided_slice %269 {offsets = [0, 128], sizes = [8, 128], strides = [1, 1]} : vector<8x384xf32> to vector<8x128xf32>
    %285 = vector.extract_strided_slice %275 {offsets = [0, 128], sizes = [8, 128], strides = [1, 1]} : vector<8x384xf32> to vector<8x128xf32>
    %286 = arith.addf %284, %285 : vector<8x128xf32>
    %287 = arith.negf %286 : vector<8x128xf32>
    %288 = math.exp %287 : vector<8x128xf32>
    %cst_92 = arith.constant 1.000000e+00 : f32
    %289 = vector.broadcast %cst_92 : f32 to vector<8x128xf32>
    %290 = arith.addf %289, %288 : vector<8x128xf32>
    %291 = arith.divf %289, %290 : vector<8x128xf32>
    %292 = vector.extract_strided_slice %269 {offsets = [0, 256], sizes = [8, 128], strides = [1, 1]} : vector<8x384xf32> to vector<8x128xf32>
    %293 = vector.extract_strided_slice %275 {offsets = [0, 256], sizes = [8, 128], strides = [1, 1]} : vector<8x384xf32> to vector<8x128xf32>
    %294 = arith.mulf %283, %293 : vector<8x128xf32>
    %295 = arith.addf %292, %294 : vector<8x128xf32>
    %296 = math.tanh %295 : vector<8x128xf32>
    %cst_93 = arith.constant 1.000000e+00 : f32
    %297 = vector.broadcast %cst_93 : f32 to vector<8x128xf32>
    %298 = arith.subf %297, %291 : vector<8x128xf32>
    %299 = arith.mulf %298, %296 : vector<8x128xf32>
    %300 = arith.mulf %291, %264 : vector<8x128xf32>
    %301 = arith.addf %299, %300 : vector<8x128xf32>
    %302 = arith.index_cast %267 : i32 to index
    %c0_94 = arith.constant 0 : index
    %303 = vector.load %arg6[%302, %c0_94] : memref<64x128xf32, #tpu.memory_space<vmem>>, vector<8x128xf32>
    tpu.vector_store %arg6[%302, %c0_94], %301 {strides = array<i32>} : memref<64x128xf32, #tpu.memory_space<vmem>>, vector<8x128xf32>,
    %c8_i32_95 = arith.constant 8 : i32
    return
  }
  func.func @transform_0(%arg0: i32) -> (i32, i32) {
    %c0_i32 = arith.constant 0 : i32
    %c0_i32_0 = arith.constant 0 : i32
    %c0_i32_1 = arith.constant 0 : i32
    return %c0_i32, %c0_i32_0 : i32, i32
  }
  func.func @transform_1(%arg0: i32) -> (i32, i32) {
    %c0_i32 = arith.constant 0 : i32
    %c0_i32_0 = arith.constant 0 : i32
    %c0_i32_1 = arith.constant 0 : i32
    return %c0_i32, %c0_i32_0 : i32, i32
  }
  func.func @transform_2(%arg0: i32) -> (i32, i32) {
    %c0_i32 = arith.constant 0 : i32
    %c0_i32_0 = arith.constant 0 : i32
    %c0_i32_1 = arith.constant 0 : i32
    return %c0_i32, %c0_i32_0 : i32, i32
  }
  func.func @transform_3(%arg0: i32) -> (i32, i32) {
    %c0_i32 = arith.constant 0 : i32
    %c0_i32_0 = arith.constant 0 : i32
    %c0_i32_1 = arith.constant 0 : i32
    return %c0_i32, %c0_i32_0 : i32, i32
  }
  func.func @transform_4(%arg0: i32) -> (i32, i32) {
    %c0_i32 = arith.constant 0 : i32
    %c0_i32_0 = arith.constant 0 : i32
    %c0_i32_1 = arith.constant 0 : i32
    return %c0_i32, %c0_i32_0 : i32, i32
  }
  func.func @transform_5(%arg0: i32) -> (i32, i32) {
    %c0_i32 = arith.constant 0 : i32
    %c0_i32_0 = arith.constant 0 : i32
    %c0_i32_1 = arith.constant 0 : i32
    return %c0_i32, %c0_i32_0 : i32, i32
  }
}

</mosaic_0001>

<bundles_post_ra>
// kernel: tpu_custom_call.1
= control target key start
LH: loop header
LB: loop body
LE: loop exit
PB: predicated region body
PF: predicated region fallthrough
CT: control target
= control target key end

     0   :  { %10 = vsyncpa [#allocation4], 0  ;;  %s4114_s0 = inlined_call_operand.hbm [shape: bf16[64,128], index: 0, kind: input, shape index: {}]   ;;  %s4115_s1 = inlined_call_operand.hbm [shape: bf16[128,384], index: 1, kind: input, shape index: {}]   ;;  %s4116_s2 = inlined_call_operand.hbm [shape: bf16[128,384], index: 2, kind: input, shape index: {}]   ;;  %s4117_s3 = inlined_call_operand.vmem [shape: f32[1,384], index: 3, kind: input, shape index: {}]   ;;  %s4118_s4 = inlined_call_operand.vmem [shape: f32[1,384], index: 4, kind: input, shape index: {}]   ;;  %s4119_s5 = inlined_call_operand.hbm [shape: f32[64,128], index: 5, kind: output, shape index: {}]  }
   0x1   :  { %11 = vsyncpa [#allocation7], 0 }
   0x2   :  { %12 = vsyncpa [#allocation5], 0  ;;  %s3562_s18 = smov [#allocation6]   ;;  %s3468_s22 = scalar_lea.hbm %s4115_s1, 3072 }
   0x3   :  { %s30_s19 = sshll.u32 %s3562_s18, 4  ;;  %p3469_p0 = scmp.ne.s32.totalorder %s4115_s1, %s3468_s22  ;;  %s31_s19 = int_to_ptr.vmem [resolvable:$true] %s30_s19 }
   0x4   :  { %p3472_p1 = scmp.lt.u32.totalorder %s3468_s22, %s4115_s1 }
   0x6   :  { %p3474_p2 = pnand %p3472_p1, %p3469_p0 }
   0x8   :  { %3477 = shalt.err (!%p3474_p2)
}
   0x9   :  { %s3478_s27 = scalar_lea.vmem %s31_s19, 3072  ;;  %p3483_p4 = scmp.lt.s32.totalorder %s31_s19, %s31_s19 }
   0xa   :  { %p3479_p3 = scmp.ne.s32.totalorder %s31_s19, %s3478_s27  ;;  %p3484_p5 = scmp.lt.s32.totalorder %s3478_s27, %s3478_s27 }
   0xc   :  { %p3485_p6 = por %p3484_p5, %p3483_p4 }
   0xe   :  { %p3486_p7 = pnand %p3485_p6, %p3479_p3 }
  0x10   :  { %3489 = shalt.err (!%p3486_p7)
}
  0x11   :  { %s3563_s28 = smov 192   ;;  %s3564_s29 = smov 12  }
  0x12   :  { %36 = dma.hbm_to_vmem [thread:$0]  %s4115_s1, 3072, %s31_s19, [#allocation7], %s3563_s28, %s3563_s28, %s3564_s29  }
  0x13   :  { %s3565_s7 = smov [#allocation3]   ;;  %s3490_s11 = scalar_lea.hbm %s4114_s0, 512 }
  0x14   :  { %s18_s8 = sshll.u32 %s3565_s7, 4  ;;  %p3491_p8 = scmp.ne.s32.totalorder %s4114_s0, %s3490_s11  ;;  %s19_s8 = int_to_ptr.vmem [resolvable:$true] %s18_s8 }
  0x15   :  { %p3494_p9 = scmp.lt.u32.totalorder %s3490_s11, %s4114_s0 }
  0x17   :  { %p3496_p10 = pnand %p3494_p9, %p3491_p8 }
  0x19   :  { %3499 = shalt.err (!%p3496_p10)
}
  0x1a   :  { %s3500_s16 = scalar_lea.vmem %s19_s8, 512  ;;  %p3505_p12 = scmp.lt.s32.totalorder %s19_s8, %s19_s8 }
  0x1b   :  { %p3501_p11 = scmp.ne.s32.totalorder %s19_s8, %s3500_s16  ;;  %p3506_p13 = scmp.lt.s32.totalorder %s3500_s16, %s3500_s16 }
  0x1d   :  { %p3507_p0 = por %p3506_p13, %p3505_p12 }
  0x1f   :  { %p3508_p1 = pnand %p3507_p0, %p3501_p11 }
  0x21   :  { %3511 = shalt.err (!%p3508_p1)
}
  0x22   :  { %s3566_s1 = smov 64   ;;  %s3567_s17 = smov 4  }
  0x23   :  { %24 = dma.hbm_to_vmem [thread:$0]  %s4114_s0, 512, %s19_s8, [#allocation4], %s3566_s1, %s3566_s1, %s3567_s17  }
  0x24   :  { %s3568_s20 = smov [#allocation8]   ;;  %s3512_s24 = scalar_lea.hbm %s4116_s2, 3072 }
  0x25   :  { %s42_s21 = sshll.u32 %s3568_s20, 4  ;;  %p3513_p2 = scmp.ne.s32.totalorder %s4116_s2, %s3512_s24  ;;  %s43_s21 = int_to_ptr.vmem [resolvable:$true] %s42_s21 }
  0x26   :  { %p3516_p3 = scmp.lt.u32.totalorder %s3512_s24, %s4116_s2 }
  0x28   :  { %p3518_p4 = pnand %p3516_p3, %p3513_p2 }
  0x2a   :  { %3521 = shalt.err (!%p3518_p4)
}
  0x2b   :  { %s3522_s6 = scalar_lea.vmem %s43_s21, 3072  ;;  %p3527_p6 = scmp.lt.s32.totalorder %s43_s21, %s43_s21 }
  0x2c   :  { %p3523_p5 = scmp.ne.s32.totalorder %s43_s21, %s3522_s6  ;;  %p3528_p7 = scmp.lt.s32.totalorder %s3522_s6, %s3522_s6 }
  0x2e   :  { %p3529_p8 = por %p3528_p7, %p3527_p6 }
  0x30   :  { %p3530_p9 = pnand %p3529_p8, %p3523_p5 }
  0x32   :  { %3533 = shalt.err (!%p3530_p9)
}
  0x33   :  { %48 = dma.hbm_to_vmem [thread:$0]  %s4116_s2, 3072, %s43_s21, [#allocation7], %s3563_s28, %s3563_s28, %s3564_s29  }
  0x34   :  { %3556 = dma.done.wait [#allocation4], 512  }
  0x35   :  { %3557 = vsyncadd [#allocation4], 4294966784 }
  0x36   :  { %3558 = dma.done.wait [#allocation7], 6144  }
  0x37   :  { %3559 = vsyncadd [#allocation7], 4294961152  ;;  %v4122_v0 = vmov 0   ;;  %v3240_v1 = vld [vmem:[#allocation6 + $0x4] ss:$12 sps:$4 sm:$0xff]   ;;  %v3275_v31 = vld [vmem:[#allocation3 + $0x8] sm:$0xff]   ;;  %v105_v62 = vlaneseq }
  0x38   :  { %304 = vmatprep.mubr.bf16.mxu0 %v4122_v0  ;;  %v3242_v2 = vld [vmem:[#allocation6] ss:$12 sps:$4 sm:$0xff]   ;;  %272 = vmatprep.subr.bf16.mxu0 %v3240_v1  ;;  %v3243_v3 = vld [vmem:[#allocation6 + $0x1c] ss:$12 sps:$4 sm:$0xff]   ;;  %v3245_v4 = vld [vmem:[#allocation6 + $0x18] ss:$12 sps:$4 sm:$0xff]  }
  0x39   :  { %273 = vmatpush1.bf16.msra.mxu0 %v3242_v2  ;;  %v3246_v5 = vld [vmem:[#allocation6 + $0x34] ss:$12 sps:$4 sm:$0xff]   ;;  %v3248_v6 = vld [vmem:[#allocation6 + $0x30] ss:$12 sps:$4 sm:$0xff]   ;;  %v3249_v7 = vld [vmem:[#allocation6 + $0x4c] ss:$12 sps:$4 sm:$0xff]  }
  0x3a   :  { %274 = vmatprep.subr.bf16.mxu0 %v3243_v3  ;;  %v3261_v8 = vld [vmem:[#allocation6 + $0x8] ss:$12 sps:$4 sm:$0xff]   ;;  %v3252_v10 = vld [vmem:[#allocation6 + $0x64] ss:$12 sps:$4 sm:$0xff]   ;;  %v3265_v11 = vld [vmem:[#allocation6 + $0x20] ss:$12 sps:$4 sm:$0xff]  }
  0x3b   :  { %v3251_v9 = vld [vmem:[#allocation6 + $0x48] ss:$12 sps:$4 sm:$0xff]   ;;  %3043 = vmatprep.subr.bf16.mxu1 %v3261_v8  ;;  %v3266_v12 = vld [vmem:[#allocation3] sm:$0xff]   ;;  %v3274_v16 = vld [vmem:[#allocation6 + $0x50] ss:$12 sps:$4 sm:$0xff]   ;;  %v4120_v38 = vmov 0.0  }
  0x3c   :  { %3044 = vmatpush3.bf16.msra.mxu1 %v3261_v8  ;;  %v3254_v13 = vld [vmem:[#allocation6 + $0x60] ss:$12 sps:$4 sm:$0xff]   ;;  %v3270_v14 = vld [vmem:[#allocation6 + $0x38] ss:$12 sps:$4 sm:$0xff]   ;;  %3059 = vmatprep.mubr.bf16.mxu1 %v3266_v12  ;;  %v3255_v15 = vld [vmem:[#allocation6 + $0x7c] ss:$12 sps:$4 sm:$0xff]  }
  0x3d   :  { %275 = vmatpush1.bf16.msra.mxu0 %v3245_v4  ;;  %3045 = vmatprep.subr.bf16.mxu1 %v3265_v11  ;;  %v3257_v17 = vld [vmem:[#allocation6 + $0x78] ss:$12 sps:$4 sm:$0xff]   ;;  %v3258_v18 = vld [vmem:[#allocation6 + $0x94] ss:$12 sps:$4 sm:$0xff]   ;;  %v3260_v20 = vld [vmem:[#allocation6 + $0x90] ss:$12 sps:$4 sm:$0xff]  }
  0x3e   :  { %276 = vmatprep.subr.bf16.mxu0 %v3246_v5  ;;  %v3279_v19 = vld [vmem:[#allocation6 + $0x68] ss:$12 sps:$4 sm:$0xff]   ;;  %v3262_v21 = vld [vmem:[#allocation6 + $0xac] ss:$12 sps:$4 sm:$0xff]   ;;  %v3648_v24 = vld [vmem:[#allocation8 + $0x4] ss:$12 sps:$4 sm:$0xff]  }
  0x3f   :  { %v3283_v22 = vld [vmem:[#allocation6 + $0x80] ss:$12 sps:$4 sm:$0xff]   ;;  %v3264_v23 = vld [vmem:[#allocation6 + $0xa8] ss:$12 sps:$4 sm:$0xff]   ;;  %v3288_v25 = vld [vmem:[#allocation6 + $0x98] ss:$12 sps:$4 sm:$0xff]  }
  0x40   :  { %3046 = vmatpush3.bf16.msra.mxu1 %v3265_v11  ;;  %v3650_v26 = vld [vmem:[#allocation8] ss:$12 sps:$4 sm:$0xff]   ;;  %v3653_v27 = vld [vmem:[#allocation8 + $0x1c] ss:$12 sps:$4 sm:$0xff]   ;;  %v3656_v29 = vld [vmem:[#allocation8 + $0x18] ss:$12 sps:$4 sm:$0xff]  }
  0x41   :  { %277 = vmatpush1.bf16.msra.mxu0 %v3248_v6  ;;  %3047 = vmatprep.subr.bf16.mxu1 %v3270_v14  ;;  %v3292_v28 = vld [vmem:[#allocation6 + $0xb0] ss:$12 sps:$4 sm:$0xff]   ;;  %v3660_v30 = vld [vmem:[#allocation8 + $0x34] ss:$12 sps:$4 sm:$0xff]   ;;  %v3666_v33 = vld [vmem:[#allocation8 + $0x4c] ss:$12 sps:$4 sm:$0xff]  }
  0x42   :  { %278 = vmatprep.subr.bf16.mxu0 %v3249_v7  ;;  %v3663_v32 = vld [vmem:[#allocation8 + $0x30] ss:$12 sps:$4 sm:$0xff]   ;;  %v3668_v34 = vld [vmem:[#allocation8 + $0x48] ss:$12 sps:$4 sm:$0xff]   ;;  %v3301_v39 = vld [vmem:[#allocation8 + $0x20] ss:$12 sps:$4 sm:$0xff]  }
  0x43   :  { %v3284_v35 = vld [vmem:[#allocation3 + $0x10] sm:$0xff]   ;;  %v3676_v40 = vld [vmem:[#allocation8 + $0x60] ss:$12 sps:$4 sm:$0xff]   ;;  %v3678_v41 = vld [vmem:[#allocation8 + $0x7c] ss:$12 sps:$4 sm:$0xff]   ;;  %vm3571_vm0 = vmmov 0  }
  0x44   :  { %3048 = vmatpush3.bf16.msra.mxu1 %v3270_v14  ;;  %v3297_v36 = vld [vmem:[#allocation8 + $0x8] ss:$12 sps:$4 sm:$0xff]   ;;  %v3670_v37 = vld [vmem:[#allocation8 + $0x64] ss:$12 sps:$4 sm:$0xff]   ;;  %v3293_v43 = vld [vmem:[#allocation3 + $0x18] sm:$0xff]   ;;  %v106_v63 = vshrl.u32 %v105_v62, 7 }
  0x45   :  { %279 = vmatpush1.bf16.msra.mxu0 %v3251_v9  ;;  %3049 = vmatprep.subr.bf16.mxu1 %v3274_v16  ;;  %v3302_v42 = vld [vmem:[#allocation8 + $0x38] ss:$12 sps:$4 sm:$0xff]   ;;  %v3685_v45 = vld [vmem:[#allocation8 + $0x94] ss:$12 sps:$4 sm:$0xff]   ;;  %v3303_v46 = vld [vmem:[#allocation8 + $0x50] ss:$12 sps:$4 sm:$0xff]  }
  0x46   :  { %280 = vmatprep.subr.bf16.mxu0 %v3252_v10  ;;  %v3683_v44 = vld [vmem:[#allocation8 + $0x78] ss:$12 sps:$4 sm:$0xff]   ;;  %v3691_v47 = vld [vmem:[#allocation8 + $0x90] ss:$12 sps:$4 sm:$0xff]   ;;  %v3304_v49 = vld [vmem:[#allocation8 + $0x68] ss:$12 sps:$4 sm:$0xff]  }
  0x47   :  { %v3695_v48 = vld [vmem:[#allocation8 + $0xac] ss:$12 sps:$4 sm:$0xff]   ;;  %v3700_v50 = vld [vmem:[#allocation8 + $0xa8] ss:$12 sps:$4 sm:$0xff]   ;;  %v3307_v53 = vld [vmem:[#allocation8 + $0xb0] ss:$12 sps:$4 sm:$0xff]  }
  0x48   :  { %3050 = vmatpush3.bf16.msra.mxu1 %v3274_v16  ;;  %v3305_v51 = vld [vmem:[#allocation8 + $0x80] ss:$12 sps:$4 sm:$0xff]   ;;  %v3306_v52 = vld [vmem:[#allocation8 + $0x98] ss:$12 sps:$4 sm:$0xff]   ;;  %v3308_v54 = vld [vmem:[#allocation8 + $0x8] ss:$12 sps:$4 sm:$0xff]  }
  0x49   :  { %281 = vmatpush1.bf16.msra.mxu0 %v3254_v13  ;;  %3051 = vmatprep.subr.bf16.mxu1 %v3279_v19  ;;  %v3309_v55 = vld [vmem:[#allocation8 + $0x20] ss:$12 sps:$4 sm:$0xff]   ;;  %v3310_v56 = vld [vmem:[#allocation8 + $0x38] ss:$12 sps:$4 sm:$0xff]   ;;  %v3311_v57 = vld [vmem:[#allocation8 + $0x50] ss:$12 sps:$4 sm:$0xff]  }
  0x4a   :  { %282 = vmatprep.subr.bf16.mxu0 %v3255_v15  ;;  %v3312_v58 = vld [vmem:[#allocation8 + $0x68] ss:$12 sps:$4 sm:$0xff]   ;;  %v3313_v59 = vld [vmem:[#allocation8 + $0x80] ss:$12 sps:$4 sm:$0xff]   ;;  %v3314_v60 = vld [vmem:[#allocation8 + $0x98] ss:$12 sps:$4 sm:$0xff]  }
  0x4b   :  { %v3315_v61 = vld [vmem:[#allocation8 + $0xb0] ss:$12 sps:$4 sm:$0xff]   ;;  %v3741_v1 = vsub.s32 0, %v106_v63  ;;  %v103_v2 = vld [vmem:[%s4117_s3] sm:$0x7]  ;;  %v3746_v3 = vsub.s32 1, %v106_v63 }
  0x4c   :  { %3052 = vmatpush3.bf16.msra.mxu1 %v3279_v19  ;;  %v3752_v11 = vsub.s32 2, %v106_v63 }
  0x4d   :  { %283 = vmatpush1.bf16.msra.mxu0 %v3257_v17  ;;  %3053 = vmatprep.subr.bf16.mxu1 %v3283_v22  ;;  %v108_v5 = vrot.slane %v103_v2, %v3741_v1  ;;  %v112_v7 = vrot.slane %v103_v2, %v3746_v3 }
  0x4e   :  { %284 = vmatprep.subr.bf16.mxu0 %v3258_v18  ;;  %v3757_v13 = vrot.slane %v103_v2, %v3752_v11 }
  0x50   :  { %3054 = vmatpush3.bf16.msra.mxu1 %v3283_v22 }
  0x51   :  { %285 = vmatpush1.bf16.msra.mxu0 %v3260_v20  ;;  %3055 = vmatprep.subr.bf16.mxu1 %v3288_v25 }
  0x52   :  { %286 = vmatprep.subr.bf16.mxu0 %v3262_v21 }
  0x54   :  { %3056 = vmatpush3.bf16.msra.mxu1 %v3288_v25 }
  0x55   :  { %287 = vmatpush1.bf16.msra.mxu0 %v3264_v23  ;;  %3057 = vmatprep.subr.bf16.mxu1 %v3292_v28 }
  0x56   :  { %614 = vmatprep.subr.bf16.mxu0 %v3648_v24 }
  0x58   :  { %305 = vmatmul.mubr.bf16.vlgmr.msra.gmra.mrb[0].mxu0 %v3266_v12  ;;  %3058 = vmatpush3.bf16.msra.mxu1 %v3292_v28 }
  0x59   :  { %615 = vmatpush1.bf16.msra.mxu0 %v3650_v26  ;;  %314 = vmatprep.mubr.bf16.mxu0 %v4122_v0 }
  0x5a   :  { %616 = vmatprep.subr.bf16.mxu0 %v3653_v27  ;;  %3067 = vmatprep.subr.bf16.mxu1 %v4120_v38 }
  0x5b   :  { %3060 = vmatmul.mubr.bf16.vlgmr.msra.gmra.mrb[0].mxu1 %v3275_v31 }
  0x5c   :  { %3068 = vmatpush3.bf16.msra.mxu1 %v3297_v36  ;;  %3063 = vmatprep.mubr.bf16.mxu1 %v3284_v35 }
  0x5d   :  { %617 = vmatpush1.bf16.msra.mxu0 %v3656_v29  ;;  %3069 = vmatprep.subr.bf16.mxu1 %v4120_v38 }
  0x5e   :  { %618 = vmatprep.subr.bf16.mxu0 %v3660_v30 }
  0x60   :  { %315 = vmatmul.mubr.bf16.gmra.mrb[4].mxu0 %v3275_v31  ;;  %3070 = vmatpush3.bf16.msra.mxu1 %v3301_v39 }
  0x61   :  { %619 = vmatpush1.bf16.msra.mxu0 %v3663_v32  ;;  %324 = vmatprep.mubr.bf16.mxu0 %v4122_v0 }
  0x62   :  { %620 = vmatprep.subr.bf16.mxu0 %v3666_v33  ;;  %3071 = vmatprep.subr.bf16.mxu1 %v4120_v38 }
  0x63   :  { %3064 = vmatmul.mubr.bf16.gmra.mrb[4].mxu1 %v3293_v43 }
  0x64   :  { %3072 = vmatpush3.bf16.msra.mxu1 %v3302_v42  ;;  %3083 = vmatprep.mubr.msk.bf16.mxu1 %vm3571_vm0, %v4120_v38 }
  0x65   :  { %621 = vmatpush1.bf16.msra.mxu0 %v3668_v34  ;;  %3073 = vmatprep.subr.bf16.mxu1 %v4120_v38 }
  0x66   :  { %622 = vmatprep.subr.bf16.mxu0 %v3670_v37 }
  0x68   :  { %325 = vmatmul.mubr.bf16.gmra.mrb[8].mxu0 %v3284_v35  ;;  %3074 = vmatpush3.bf16.msra.mxu1 %v3303_v46 }
  0x69   :  { %623 = vmatpush1.bf16.msra.mxu0 %v3676_v40  ;;  %334 = vmatprep.mubr.bf16.mxu0 %v4122_v0 }
  0x6a   :  { %624 = vmatprep.subr.bf16.mxu0 %v3678_v41  ;;  %3075 = vmatprep.subr.bf16.mxu1 %v4120_v38 }
  0x6c   :  { %3076 = vmatpush3.bf16.msra.mxu1 %v3304_v49 }
  0x6d   :  { %625 = vmatpush1.bf16.msra.mxu0 %v3683_v44  ;;  %3077 = vmatprep.subr.bf16.mxu1 %v4120_v38 }
  0x6e   :  { %626 = vmatprep.subr.bf16.mxu0 %v3685_v45 }
  0x70   :  { %335 = vmatmul.mubr.bf16.gmra.mrb[12].mxu0 %v3293_v43  ;;  %3078 = vmatpush3.bf16.msra.mxu1 %v3305_v51 }
  0x71   :  { %627 = vmatpush1.bf16.msra.mxu0 %v3691_v47  ;;  %646 = vmatprep.mubr.bf16.mxu0 %v4122_v0 }
  0x72   :  { %628 = vmatprep.subr.bf16.mxu0 %v3695_v48  ;;  %3079 = vmatprep.subr.bf16.mxu1 %v4120_v38 }
  0x74   :  { %3080 = vmatpush3.bf16.msra.mxu1 %v3306_v52 }
  0x75   :  { %629 = vmatpush1.bf16.msra.mxu0 %v3700_v50  ;;  %3081 = vmatprep.subr.bf16.mxu1 %v4120_v38 }
  0x76   :  { %898 = vmatprep.subr.bf16.mxu0 %v3648_v24 }
  0x78   :  { %647 = vmatmul.mubr.bf16.vlgmr.msra.gmra.mrb[16].mxu0 %v4122_v0  ;;  %3082 = vmatpush3.bf16.msra.mxu1 %v3307_v53 }
  0x79   :  { %899 = vmatpush1.bf16.msra.mxu0 %v3650_v26  ;;  %930 = vmatprep.mubr.bf16.mxu0 %v4122_v0 }
  0x7a   :  { %900 = vmatprep.subr.bf16.mxu0 %v3653_v27  ;;  %3087 = vmatprep.subr.bf16.mxu1 %v4120_v38 }
  0x7b   :  { %3084 = vmatmul.mubr.bf16.vlgmr.msra.gmra.mrb[8].mxu1 %v4122_v0 }
  0x7c   :  { %3103 = vmatprep.mubr.msk.bf16.mxu1 %vm3571_vm0, %v4120_v38  ;;  %3088 = vmatpush3.bf16.msra.mxu1 %v3308_v54 }
  0x7d   :  { %901 = vmatpush1.bf16.msra.mxu0 %v3656_v29  ;;  %3089 = vmatprep.subr.bf16.mxu1 %v4120_v38 }
  0x7e   :  { %902 = vmatprep.subr.bf16.mxu0 %v3660_v30 }
  0x80   :  { %3090 = vmatpush3.bf16.msra.mxu1 %v3309_v55 }
  0x81   :  { %903 = vmatpush1.bf16.msra.mxu0 %v3663_v32  ;;  %3091 = vmatprep.subr.bf16.mxu1 %v4120_v38 }
  0x82   :  { %904 = vmatprep.subr.bf16.mxu0 %v3666_v33 }
  0x84   :  { %3092 = vmatpush3.bf16.msra.mxu1 %v3310_v56 }
  0x85   :  { %905 = vmatpush1.bf16.msra.mxu0 %v3668_v34  ;;  %3093 = vmatprep.subr.bf16.mxu1 %v4120_v38 }
  0x86   :  { %906 = vmatprep.subr.bf16.mxu0 %v3670_v37 }
  0x88   :  { %3094 = vmatpush3.bf16.msra.mxu1 %v3311_v57 }
  0x89   :  { %907 = vmatpush1.bf16.msra.mxu0 %v3676_v40  ;;  %3095 = vmatprep.subr.bf16.mxu1 %v4120_v38 }
  0x8a   :  { %908 = vmatprep.subr.bf16.mxu0 %v3678_v41 }
  0x8c   :  { %3096 = vmatpush3.bf16.msra.mxu1 %v3312_v58 }
  0x8d   :  { %909 = vmatpush1.bf16.msra.mxu0 %v3683_v44  ;;  %3097 = vmatprep.subr.bf16.mxu1 %v4120_v38 }
  0x8e   :  { %910 = vmatprep.subr.bf16.mxu0 %v3685_v45 }
  0x90   :  { %3098 = vmatpush3.bf16.msra.mxu1 %v3313_v59 }
  0x91   :  { %911 = vmatpush1.bf16.msra.mxu0 %v3691_v47  ;;  %3099 = vmatprep.subr.bf16.mxu1 %v4120_v38 }
  0x92   :  { %912 = vmatprep.subr.bf16.mxu0 %v3695_v48 }
  0x94   :  { %3100 = vmatpush3.bf16.msra.mxu1 %v3314_v60 }
  0x95   :  { %913 = vmatpush1.bf16.msra.mxu0 %v3700_v50  ;;  %3101 = vmatprep.subr.bf16.mxu1 %v4120_v38 }
  0x96   :  { %1182 = vmatprep.subr.bf16.mxu0 %v3648_v24 }
  0x98   :  { %3102 = vmatpush3.bf16.msra.mxu1 %v3315_v61 }
  0x99   :  { %3107 = vmatprep.subr.bf16.mxu1 %v4120_v38 }
 0x12b   :  { %v306_v4 = vpop.f32.mrb[0].mxu0 }
 0x12c   :  { %v308_v6 = vpop.f32.mrb[1].mxu0 }
 0x12d   :  { %v310_v8 = vpop.f32.mrb[2].mxu0 }
 0x12e   :  { %v3750_v9 = vadd.f32 %v310_v8, %v108_v5  ;;  %v312_v10 = vpop.f32.mrb[3].mxu0  ;;  %v3061_v19 = vpop.f32.mrb[0].mxu1 }
 0x12f   :  { %v3754_v12 = vadd.f32 %v312_v10, %v112_v7  ;;  %v3766_v22 = vadd.f32 %v3061_v19, %v3757_v13  ;;  %v379_v23 = vpop.f32.mrb[1].mxu1 }
 0x130   :  { %v3062_v28 = vpop.f32.mrb[2].mxu1 }
 0x131   :  { %v3771_v31 = vadd.f32 %v3062_v28, %v3757_v13  ;;  %v382_v35 = vpop.f32.mrb[3].mxu1 }
 0x132   :  { %v3774_v36 = vadd.f32 %v382_v35, %v3757_v13 }
 0x133   :  { %v316_v14 = vpop.f32.mrb[4].mxu0 }
 0x134   :  { %v3759_v15 = vadd.f32 %v316_v14, %v108_v5  ;;  %v318_v16 = vpop.f32.mrb[5].mxu0  ;;  %v469_v14 = vld [vmem:[%s4118_s4] sm:$0x7] }
 0x135   :  { %v3761_v17 = vadd.f32 %v318_v16, %v112_v7  ;;  %v320_v18 = vpop.f32.mrb[6].mxu0  ;;  %v478_v28 = vrot.slane %v469_v14, %v3746_v3 }
 0x136   :  { %v3763_v20 = vadd.f32 %v320_v18, %v108_v5  ;;  %v322_v21 = vpop.f32.mrb[7].mxu0  ;;  %v3065_v51 = vpop.f32.mrb[4].mxu1 }
 0x137   :  { %v3768_v25 = vadd.f32 %v322_v21, %v112_v7  ;;  %v3783_v54 = vadd.f32 %v3065_v51, %v3757_v13  ;;  %v395_v55 = vpop.f32.mrb[5].mxu1  ;;  %v474_v21 = vrot.slane %v469_v14, %v3741_v1  ;;  %v309_v51 = vadd.f32 %v308_v6, %v112_v7 }
 0x138   :  { %v3788_v57 = vadd.f32 %v395_v55, %v3757_v13  ;;  %v3066_v58 = vpop.f32.mrb[6].mxu1 }
 0x139   :  { %v3791_v59 = vadd.f32 %v3066_v58, %v3757_v13  ;;  %v398_v60 = vpop.f32.mrb[7].mxu1 }
 0x13a   :  { %v3794_v61 = vadd.f32 %v398_v60, %v3757_v13 }
 0x13b   :  { %v326_v39 = vpop.f32.mrb[8].mxu0  ;;  %4124 = vst [vmem:[#allocation13_spill] sm:$0xff] %v3791_v59 }
 0x13c   :  { %v3776_v42 = vadd.f32 %v326_v39, %v108_v5  ;;  %v328_v43 = vpop.f32.mrb[9].mxu0  ;;  %v307_v39 = vadd.f32 %v306_v4, %v108_v5  ;;  %v482_v4 = vrot.slane %v469_v14, %v3752_v11 }
 0x13d   :  { %v3778_v46 = vadd.f32 %v328_v43, %v112_v7  ;;  %v330_v49 = vpop.f32.mrb[10].mxu0 }
 0x13e   :  { %v3780_v52 = vadd.f32 %v330_v49, %v108_v5  ;;  %v332_v53 = vpop.f32.mrb[11].mxu0 }
 0x13f   :  { %v3785_v56 = vadd.f32 %v332_v53, %v112_v7 }
 0x143   :  { %v336_v62 = vpop.f32.mrb[12].mxu0 }
 0x144   :  { %v3796_v63 = vadd.f32 %v336_v62, %v108_v5  ;;  %v338_v2 = vpop.f32.mrb[13].mxu0 }
 0x145   :  { %v3798_v8 = vadd.f32 %v338_v2, %v112_v7  ;;  %v340_v10 = vpop.f32.mrb[14].mxu0 }
 0x146   :  { %v3803_v16 = vadd.f32 %v340_v10, %v108_v5  ;;  %v342_v18 = vpop.f32.mrb[15].mxu0 }
 0x147   :  { %v3805_v19 = vadd.f32 %v342_v18, %v112_v7 }
 0x148   :  { %4125 = vst [vmem:[#allocation14_spill] sm:$0xff] %v3803_v16 }
 0x149   :  { %4126 = vst [vmem:[#allocation15_spill] sm:$0xff] %v3805_v19 }
 0x14b   :  { %v648_v35 = vpop.f32.mrb[16].mxu0 }
 0x14c   :  { %v649_v43 = vadd.f32 %v648_v35, %v474_v21  ;;  %v650_v49 = vpop.f32.mrb[17].mxu0 }
 0x14d   :  { %v651_v53 = vadd.f32 %v650_v49, %v478_v28  ;;  %v652_v55 = vpop.f32.mrb[18].mxu0  ;;  %v380_v28 = vadd.f32 %v379_v23, %v3757_v13  ;;  %v4128_v13 = vmov 0.0   ;;  %v3316_v23 = vld [vmem:[#allocation8 + $0x8] ss:$12 sps:$4 sm:$0xff]  }
 0x14e   :  { %v695_v58 = vadd.f32 %v649_v43, %v307_v39  ;;  %v653_v60 = vpop.f32.mrb[19].mxu0  ;;  %v689_v38 = vpop.f32.mrb[8].mxu1  ;;  %v3319_v55 = vld [vmem:[#allocation8 + $0x50] ss:$12 sps:$4 sm:$0xff]  }
 0x14f   :  { %v702_v62 = vadd.f32 %v651_v53, %v309_v51  ;;  %v3085_v18 = vpop.f32.mrb[9].mxu1  ;;  %v690_v7 = vadd.f32 %v689_v38, %v482_v4  ;;  %v4127_v38 = vmov 0   ;;  %v3321_v60 = vld [vmem:[#allocation8 + $0x80] ss:$12 sps:$4 sm:$0xff]  }
 0x150   :  { %v2775_v2 = vmul.f32 -1.442695, %v695_v58  ;;  %v692_v0 = vpop.f32.mrb[10].mxu1  ;;  %v3320_v58 = vld [vmem:[#allocation8 + $0x68] ss:$12 sps:$4 sm:$0xff]  }
 0x151   :  { %v2776_v10 = vmul.f32 -1.442695, %v702_v62  ;;  %v3086_v59 = vpop.f32.mrb[11].mxu1  ;;  %v3323_v62 = vld [vmem:[#allocation8 + $0xb0] ss:$12 sps:$4 sm:$0xff]  }
 0x152   :  { %3388 = vpow2.f32 %v2775_v2  ;;  %v753_v2 = vld [vmem:[%s4118_s4] sm:$0x7] }
 0x153   :  { %3390 = vpow2.f32 %v2776_v10  ;;  %v758_v10 = vrot.slane %v753_v2, %v3741_v1  ;;  %v762_v18 = vrot.slane %v753_v2, %v3746_v3 }
 0x15c   :  { %v3389_v19 = vpop.eup %3388 }
 0x15d   :  { %v699_v16 = vadd.f32 1.0, %v3389_v19  ;;  %v3391_v5 = vpop.eup %3390  ;;  %v3318_v19 = vld [vmem:[#allocation8 + $0x38] ss:$12 sps:$4 sm:$0xff]  }
 0x15e   :  { %v706_v6 = vadd.f32 1.0, %v3391_v5 }
 0x15f   :  { %3392 = vrcp.f32 %v699_v16  ;;  %v3317_v16 = vld [vmem:[#allocation8 + $0x20] ss:$12 sps:$4 sm:$0xff]  }
 0x160   :  { %3394 = vrcp.f32 %v706_v6 }
 0x169   :  { %v3393_v21 = vpop.eup %3392 }
 0x16a   :  { %v709_v35 = vmul.f32 %v3393_v21, %v690_v7  ;;  %v3395_v43 = vpop.eup %3394 }
 0x16b   :  { %v712_v49 = vsub.f32 1.0, %v3395_v43  ;;  %v714_v51 = vmul.f32 0.0, %v3395_v43 }
 0x16c   :  { %v710_v39 = vadd.f32 %v709_v35, %v380_v28 }
 0x16e   :  { %3396 = vtanh.f32 %v710_v39 }
 0x178   :  { %v3397_v0 = vpop.eup %3396 }
 0x179   :  { %v713_v59 = vmul.f32 %v3397_v0, %v712_v49 }
 0x17b   :  { %v3811_v53 = vadd.f32 %v714_v51, %v713_v59 }
 0x17d   :  { %716 = vst [vmem:[#allocation9] sm:$0xff] %v3811_v53  ;;  %v752_v14 = vpack.c.bf16 %v3811_v53, %v3811_v53 }
 0x17f   :  { %931 = vmatmul.mubr.bf16.vlgmr.msra.gmra.mrb[20].mxu0 %v752_v14  ;;  %3104 = vmatmul.mubr.bf16.vlgmr.msra.gmra.mrb[12].mxu1 %v752_v14 }
 0x180   :  { %1183 = vmatpush1.bf16.msra.mxu0 %v3650_v26  ;;  %1214 = vmatprep.mubr.bf16.mxu0 %v4127_v38 }
 0x181   :  { %1184 = vmatprep.subr.bf16.mxu0 %v3653_v27  ;;  %3123 = vmatprep.mubr.msk.bf16.mxu1 %vm3571_vm0, %v4128_v13 }
 0x182   :  { %3108 = vmatpush3.bf16.msra.mxu1 %v3316_v23 }
 0x183   :  { %3109 = vmatprep.subr.bf16.mxu1 %v4128_v13 }
 0x184   :  { %1185 = vmatpush1.bf16.msra.mxu0 %v3656_v29 }
 0x185   :  { %1186 = vmatprep.subr.bf16.mxu0 %v3660_v30 }
 0x186   :  { %3110 = vmatpush3.bf16.msra.mxu1 %v3317_v16 }
 0x187   :  { %3111 = vmatprep.subr.bf16.mxu1 %v4128_v13 }
 0x188   :  { %1187 = vmatpush1.bf16.msra.mxu0 %v3663_v32 }
 0x189   :  { %1188 = vmatprep.subr.bf16.mxu0 %v3666_v33 }
 0x18a   :  { %3112 = vmatpush3.bf16.msra.mxu1 %v3318_v19 }
 0x18b   :  { %3113 = vmatprep.subr.bf16.mxu1 %v4128_v13 }
 0x18c   :  { %1189 = vmatpush1.bf16.msra.mxu0 %v3668_v34 }
 0x18d   :  { %1190 = vmatprep.subr.bf16.mxu0 %v3670_v37 }
 0x18e   :  { %3114 = vmatpush3.bf16.msra.mxu1 %v3319_v55  ;;  %v766_v55 = vrot.slane %v753_v2, %v3752_v11 }
 0x18f   :  { %3115 = vmatprep.subr.bf16.mxu1 %v4128_v13 }
 0x190   :  { %1191 = vmatpush1.bf16.msra.mxu0 %v3676_v40 }
 0x191   :  { %1192 = vmatprep.subr.bf16.mxu0 %v3678_v41 }
 0x192   :  { %3116 = vmatpush3.bf16.msra.mxu1 %v3320_v58 }
 0x193   :  { %3117 = vmatprep.subr.bf16.mxu1 %v4128_v13 }
 0x194   :  { %1193 = vmatpush1.bf16.msra.mxu0 %v3683_v44 }
 0x195   :  { %1194 = vmatprep.subr.bf16.mxu0 %v3685_v45 }
 0x196   :  { %3118 = vmatpush3.bf16.msra.mxu1 %v3321_v60 }
 0x197   :  { %3119 = vmatprep.subr.bf16.mxu1 %v4128_v13 }
 0x198   :  { %1195 = vmatpush1.bf16.msra.mxu0 %v3691_v47 }
 0x199   :  { %1196 = vmatprep.subr.bf16.mxu0 %v3695_v48 }
 0x19c   :  { %1197 = vmatpush1.bf16.msra.mxu0 %v3700_v50 }
 0x19d   :  { %1466 = vmatprep.subr.bf16.mxu0 %v3648_v24  ;;  %v3322_v24 = vld [vmem:[#allocation8 + $0x98] ss:$12 sps:$4 sm:$0xff]  }
 0x19e   :  { %3120 = vmatpush3.bf16.msra.mxu1 %v3322_v24 }
 0x19f   :  { %3121 = vmatprep.subr.bf16.mxu1 %v4128_v13 }
 0x1a2   :  { %3122 = vmatpush3.bf16.msra.mxu1 %v3323_v62 }
 0x1a3   :  { %3127 = vmatprep.subr.bf16.mxu1 %v4128_v13 }
 0x252   :  { %v932_v4 = vpop.f32.mrb[20].mxu0  ;;  %v973_v5 = vpop.f32.mrb[12].mxu1 }
 0x253   :  { %v933_v6 = vadd.f32 %v932_v4, %v758_v10  ;;  %v934_v7 = vpop.f32.mrb[21].mxu0  ;;  %v3105_v21 = vpop.f32.mrb[13].mxu1  ;;  %v974_v60 = vadd.f32 %v973_v5, %v766_v55 }
 0x254   :  { %v935_v28 = vadd.f32 %v934_v7, %v762_v18  ;;  %v936_v35 = vpop.f32.mrb[22].mxu0  ;;  %v976_v39 = vpop.f32.mrb[14].mxu1 }
 0x255   :  { %v979_v43 = vadd.f32 %v933_v6, %v3750_v9  ;;  %v937_v49 = vpop.f32.mrb[23].mxu0  ;;  %v3106_v0 = vpop.f32.mrb[15].mxu1 }
 0x256   :  { %v986_v59 = vadd.f32 %v935_v28, %v3754_v12 }
 0x257   :  { %v2801_v51 = vmul.f32 -1.442695, %v979_v43 }
 0x258   :  { %v2802_v14 = vmul.f32 -1.442695, %v986_v59 }
 0x259   :  { %3398 = vpow2.f32 %v2801_v51 }
 0x25a   :  { %3400 = vpow2.f32 %v2802_v14 }
 0x263   :  { %v3399_v23 = vpop.eup %3398 }
 0x264   :  { %v983_v16 = vadd.f32 1.0, %v3399_v23  ;;  %v3401_v19 = vpop.eup %3400 }
 0x265   :  { %v990_v58 = vadd.f32 1.0, %v3401_v19 }
 0x266   :  { %3402 = vrcp.f32 %v983_v16 }
 0x267   :  { %3404 = vrcp.f32 %v990_v58 }
 0x270   :  { %v3403_v24 = vpop.eup %3402 }
 0x271   :  { %v993_v62 = vmul.f32 %v3403_v24, %v974_v60  ;;  %v3405_v10 = vpop.eup %3404 }
 0x272   :  { %v996_v12 = vsub.f32 1.0, %v3405_v10  ;;  %v998_v6 = vmul.f32 %v3405_v10, %v3811_v53 }
 0x273   :  { %v994_v9 = vadd.f32 %v993_v62, %v3774_v36 }
 0x275   :  { %3406 = vtanh.f32 %v994_v9 }
 0x27f   :  { %v3407_v18 = vpop.eup %3406 }
 0x280   :  { %v997_v4 = vmul.f32 %v3407_v18, %v996_v12  ;;  %v3904_v18 = vld [vmem:[#allocation8] ss:$12 sps:$4 sm:$0xff]  }
 0x282   :  { %v3853_v7 = vadd.f32 %v998_v6, %v997_v4  ;;  %v3335_v4 = vld [vmem:[#allocation8 + $0x8] ss:$12 sps:$4 sm:$0xff]  }
 0x283   :  { %v3908_v6 = vld [vmem:[#allocation8 + $0x1c] ss:$12 sps:$4 sm:$0xff]  }
 0x284   :  { %1000 = vst [vmem:[#allocation9 + $0x8] sm:$0xff] %v3853_v7  ;;  %v1036_v2 = vpack.c.bf16 %v3853_v7, %v3853_v7 }
 0x286   :  { %1215 = vmatmul.mubr.bf16.vlgmr.msra.gmra.mrb[24].mxu0 %v1036_v2  ;;  %3124 = vmatmul.mubr.bf16.vlgmr.msra.gmra.mrb[16].mxu1 %v1036_v2  ;;  %v3339_v2 = vld [vmem:[#allocation8 + $0x20] ss:$12 sps:$4 sm:$0xff]  }
 0x287   :  { %1467 = vmatpush1.bf16.msra.mxu0 %v3650_v26  ;;  %1498 = vmatprep.mubr.bf16.mxu0 %v4127_v38  ;;  %v3324_v26 = vld [vmem:[#allocation8 + $0x8] ss:$12 sps:$4 sm:$0xff]  }
 0x288   :  { %1468 = vmatprep.subr.bf16.mxu0 %v3653_v27  ;;  %3143 = vmatprep.mubr.msk.bf16.mxu1 %vm3571_vm0, %v4128_v13  ;;  %v3325_v27 = vld [vmem:[#allocation8 + $0x20] ss:$12 sps:$4 sm:$0xff]  }
 0x289   :  { %3128 = vmatpush3.bf16.msra.mxu1 %v3324_v26  ;;  %v3915_v26 = vld [vmem:[#allocation8 + $0x34] ss:$12 sps:$4 sm:$0xff]  }
 0x28a   :  { %3129 = vmatprep.subr.bf16.mxu1 %v4128_v13 }
 0x28b   :  { %1469 = vmatpush1.bf16.msra.mxu0 %v3656_v29  ;;  %v3326_v29 = vld [vmem:[#allocation8 + $0x38] ss:$12 sps:$4 sm:$0xff]  }
 0x28c   :  { %1470 = vmatprep.subr.bf16.mxu0 %v3660_v30  ;;  %v3327_v30 = vld [vmem:[#allocation8 + $0x50] ss:$12 sps:$4 sm:$0xff]  }
 0x28d   :  { %3130 = vmatpush3.bf16.msra.mxu1 %v3325_v27  ;;  %v3918_v27 = vld [vmem:[#allocation8 + $0x30] ss:$12 sps:$4 sm:$0xff]  }
 0x28e   :  { %3131 = vmatprep.subr.bf16.mxu1 %v4128_v13 }
 0x28f   :  { %1471 = vmatpush1.bf16.msra.mxu0 %v3663_v32  ;;  %v3328_v32 = vld [vmem:[#allocation8 + $0x68] ss:$12 sps:$4 sm:$0xff]  }
 0x290   :  { %1472 = vmatprep.subr.bf16.mxu0 %v3666_v33  ;;  %v3329_v33 = vld [vmem:[#allocation8 + $0x80] ss:$12 sps:$4 sm:$0xff]  }
 0x291   :  { %3132 = vmatpush3.bf16.msra.mxu1 %v3326_v29  ;;  %v3343_v29 = vld [vmem:[#allocation8 + $0x38] ss:$12 sps:$4 sm:$0xff]  }
 0x292   :  { %3133 = vmatprep.subr.bf16.mxu1 %v4128_v13 }
 0x293   :  { %1473 = vmatpush1.bf16.msra.mxu0 %v3668_v34  ;;  %v3330_v34 = vld [vmem:[#allocation8 + $0x98] ss:$12 sps:$4 sm:$0xff]  }
 0x294   :  { %1474 = vmatprep.subr.bf16.mxu0 %v3670_v37  ;;  %v3331_v37 = vld [vmem:[#allocation8 + $0xb0] ss:$12 sps:$4 sm:$0xff]  }
 0x295   :  { %3134 = vmatpush3.bf16.msra.mxu1 %v3327_v30  ;;  %v3922_v30 = vld [vmem:[#allocation8 + $0x4c] ss:$12 sps:$4 sm:$0xff]  }
 0x296   :  { %3135 = vmatprep.subr.bf16.mxu1 %v4128_v13 }
 0x297   :  { %1475 = vmatpush1.bf16.msra.mxu0 %v3676_v40  ;;  %v1037_v40 = vld [vmem:[%s4118_s4] sm:$0x7] }
 0x298   :  { %1476 = vmatprep.subr.bf16.mxu0 %v3678_v41  ;;  %v1042_v41 = vrot.slane %v1037_v40, %v3741_v1  ;;  %v1050_v23 = vrot.slane %v1037_v40, %v3752_v11 }
 0x299   :  { %3136 = vmatpush3.bf16.msra.mxu1 %v3328_v32  ;;  %v3925_v32 = vld [vmem:[#allocation8 + $0x48] ss:$12 sps:$4 sm:$0xff]  }
 0x29a   :  { %3137 = vmatprep.subr.bf16.mxu1 %v4128_v13 }
 0x29b   :  { %1477 = vmatpush1.bf16.msra.mxu0 %v3683_v44  ;;  %v1046_v44 = vrot.slane %v1037_v40, %v3746_v3  ;;  %v3351_v40 = vld [vmem:[#allocation8 + $0x68] ss:$12 sps:$4 sm:$0xff]  }
 0x29c   :  { %1478 = vmatprep.subr.bf16.mxu0 %v3685_v45 }
 0x29d   :  { %3138 = vmatpush3.bf16.msra.mxu1 %v3329_v33  ;;  %v3347_v33 = vld [vmem:[#allocation8 + $0x50] ss:$12 sps:$4 sm:$0xff]  }
 0x29e   :  { %3139 = vmatprep.subr.bf16.mxu1 %v4128_v13 }
 0x29f   :  { %1479 = vmatpush1.bf16.msra.mxu0 %v3691_v47 }
 0x2a0   :  { %1480 = vmatprep.subr.bf16.mxu0 %v3695_v48 }
 0x2a1   :  { %3140 = vmatpush3.bf16.msra.mxu1 %v3330_v34  ;;  %v3929_v34 = vld [vmem:[#allocation8 + $0x64] ss:$12 sps:$4 sm:$0xff]  }
 0x2a2   :  { %3141 = vmatprep.subr.bf16.mxu1 %v4128_v13 }
 0x2a3   :  { %1481 = vmatpush1.bf16.msra.mxu0 %v3700_v50 }
 0x2a5   :  { %3142 = vmatpush3.bf16.msra.mxu1 %v3331_v37  ;;  %v3932_v37 = vld [vmem:[#allocation8 + $0x60] ss:$12 sps:$4 sm:$0xff]  }
 0x2a6   :  { %3147 = vmatprep.subr.bf16.mxu1 %v4128_v13 }
 0x359   :  { %v1216_v45 = vpop.f32.mrb[24].mxu0  ;;  %v1257_v47 = vpop.f32.mrb[16].mxu1 }
 0x35a   :  { %v1217_v48 = vadd.f32 %v1216_v45, %v1042_v41  ;;  %v1218_v50 = vpop.f32.mrb[25].mxu0  ;;  %v3125_v36 = vpop.f32.mrb[17].mxu1  ;;  %v1258_v19 = vadd.f32 %v1257_v47, %v1050_v23  ;;  %v3935_v41 = vld [vmem:[#allocation8 + $0x7c] ss:$12 sps:$4 sm:$0xff]   ;;  %v3355_v45 = vld [vmem:[#allocation8 + $0x80] ss:$12 sps:$4 sm:$0xff]  }
 0x35b   :  { %v1219_v53 = vadd.f32 %v1218_v50, %v1046_v44  ;;  %v1220_v5 = vpop.f32.mrb[26].mxu0  ;;  %v1260_v21 = vpop.f32.mrb[18].mxu1  ;;  %v3938_v44 = vld [vmem:[#allocation8 + $0x78] ss:$12 sps:$4 sm:$0xff]   ;;  %v3942_v47 = vld [vmem:[#allocation8 + $0x94] ss:$12 sps:$4 sm:$0xff]  }
 0x35c   :  { %v1263_v28 = vadd.f32 %v1217_v48, %v3759_v15  ;;  %v1221_v35 = vpop.f32.mrb[27].mxu0  ;;  %v3126_v39 = vpop.f32.mrb[19].mxu1  ;;  %v3945_v48 = vld [vmem:[#allocation8 + $0x90] ss:$12 sps:$4 sm:$0xff]   ;;  %v3359_v50 = vld [vmem:[#allocation8 + $0x98] ss:$12 sps:$4 sm:$0xff]  }
 0x35d   :  { %v1270_v43 = vadd.f32 %v1219_v53, %v3761_v17  ;;  %v3949_v36 = vld [vmem:[#allocation8 + $0xac] ss:$12 sps:$4 sm:$0xff]   ;;  %v3952_v53 = vld [vmem:[#allocation8 + $0xa8] ss:$12 sps:$4 sm:$0xff]   ;;  %v3363_v5 = vld [vmem:[#allocation8 + $0xb0] ss:$12 sps:$4 sm:$0xff]  }
 0x35e   :  { %v2827_v49 = vmul.f32 -1.442695, %v1263_v28  ;;  %v1321_v21 = vld [vmem:[%s4118_s4] sm:$0x7] }
 0x35f   :  { %v2828_v0 = vmul.f32 -1.442695, %v1270_v43  ;;  %v1326_v28 = vrot.slane %v1321_v21, %v3741_v1  ;;  %v1330_v35 = vrot.slane %v1321_v21, %v3746_v3 }
 0x360   :  { %3408 = vpow2.f32 %v2827_v49 }
 0x361   :  { %3410 = vpow2.f32 %v2828_v0 }
 0x36a   :  { %v3409_v59 = vpop.eup %3408 }
 0x36b   :  { %v1267_v51 = vadd.f32 1.0, %v3409_v59  ;;  %v3411_v14 = vpop.eup %3410 }
 0x36c   :  { %v1274_v16 = vadd.f32 1.0, %v3411_v14 }
 0x36d   :  { %3412 = vrcp.f32 %v1267_v51 }
 0x36e   :  { %3414 = vrcp.f32 %v1274_v16 }
 0x377   :  { %v3413_v55 = vpop.eup %3412 }
 0x378   :  { %v1277_v58 = vmul.f32 %v3413_v55, %v1258_v19  ;;  %v3415_v60 = vpop.eup %3414 }
 0x379   :  { %v1280_v17 = vsub.f32 1.0, %v3415_v60  ;;  %v1282_v9 = vmul.f32 %v3415_v60, %v3853_v7  ;;  %v3911_v7 = vld [vmem:[#allocation8 + $0x18] ss:$12 sps:$4 sm:$0xff]  }
 0x37a   :  { %v1278_v15 = vadd.f32 %v1277_v58, %v3766_v22  ;;  %v3902_v22 = vld [vmem:[#allocation8 + $0x4] ss:$12 sps:$4 sm:$0xff]  }
 0x37b   :  { %1750 = vmatprep.subr.bf16.mxu0 %v3902_v22 }
 0x37c   :  { %3416 = vtanh.f32 %v1278_v15 }
 0x386   :  { %v3417_v24 = vpop.eup %3416 }
 0x387   :  { %v1281_v62 = vmul.f32 %v3417_v24, %v1280_v17 }
 0x389   :  { %v3894_v10 = vadd.f32 %v1282_v9, %v1281_v62  ;;  %v1334_v9 = vrot.slane %v1321_v21, %v3752_v11 }
 0x38b   :  { %1284 = vst [vmem:[#allocation9 + $0x10] sm:$0xff] %v3894_v10  ;;  %v1320_v12 = vpack.c.bf16 %v3894_v10, %v3894_v10 }
 0x38d   :  { %1499 = vmatmul.mubr.bf16.vlgmr.msra.gmra.mrb[28].mxu0 %v1320_v12  ;;  %3144 = vmatmul.mubr.bf16.vlgmr.msra.gmra.mrb[20].mxu1 %v1320_v12 }
 0x38e   :  { %1782 = vmatprep.mubr.bf16.mxu0 %v4127_v38  ;;  %3163 = vmatprep.mubr.msk.bf16.mxu1 %vm3571_vm0, %v4128_v13 }
 0x38f   :  { %1751 = vmatpush1.bf16.msra.mxu0 %v3904_v18  ;;  %3148 = vmatpush3.bf16.msra.mxu1 %v3335_v4 }
 0x390   :  { %3149 = vmatprep.subr.bf16.mxu1 %v4128_v13  ;;  %1752 = vmatprep.subr.bf16.mxu0 %v3908_v6 }
 0x393   :  { %1753 = vmatpush1.bf16.msra.mxu0 %v3911_v7  ;;  %3150 = vmatpush3.bf16.msra.mxu1 %v3339_v2 }
 0x394   :  { %3151 = vmatprep.subr.bf16.mxu1 %v4128_v13  ;;  %1754 = vmatprep.subr.bf16.mxu0 %v3915_v26 }
 0x397   :  { %1755 = vmatpush1.bf16.msra.mxu0 %v3918_v27  ;;  %3152 = vmatpush3.bf16.msra.mxu1 %v3343_v29 }
 0x398   :  { %3153 = vmatprep.subr.bf16.mxu1 %v4128_v13  ;;  %1756 = vmatprep.subr.bf16.mxu0 %v3922_v30 }
 0x39b   :  { %1757 = vmatpush1.bf16.msra.mxu0 %v3925_v32  ;;  %3154 = vmatpush3.bf16.msra.mxu1 %v3347_v33 }
 0x39c   :  { %3155 = vmatprep.subr.bf16.mxu1 %v4128_v13  ;;  %1758 = vmatprep.subr.bf16.mxu0 %v3929_v34 }
 0x39f   :  { %1759 = vmatpush1.bf16.msra.mxu0 %v3932_v37  ;;  %3156 = vmatpush3.bf16.msra.mxu1 %v3351_v40 }
 0x3a0   :  { %1760 = vmatprep.subr.bf16.mxu0 %v3935_v41  ;;  %3157 = vmatprep.subr.bf16.mxu1 %v4128_v13 }
 0x3a3   :  { %1761 = vmatpush1.bf16.msra.mxu0 %v3938_v44  ;;  %3158 = vmatpush3.bf16.msra.mxu1 %v3355_v45 }
 0x3a4   :  { %1762 = vmatprep.subr.bf16.mxu0 %v3942_v47  ;;  %3159 = vmatprep.subr.bf16.mxu1 %v4128_v13 }
 0x3a7   :  { %1763 = vmatpush1.bf16.msra.mxu0 %v3945_v48  ;;  %3160 = vmatpush3.bf16.msra.mxu1 %v3359_v50 }
 0x3a8   :  { %1764 = vmatprep.subr.bf16.mxu0 %v3949_v36  ;;  %3161 = vmatprep.subr.bf16.mxu1 %v4128_v13 }
 0x3ab   :  { %1765 = vmatpush1.bf16.msra.mxu0 %v3952_v53  ;;  %3162 = vmatpush3.bf16.msra.mxu1 %v3363_v5 }
 0x3ac   :  { %2034 = vmatprep.subr.bf16.mxu0 %v3902_v22  ;;  %3167 = vmatprep.subr.bf16.mxu1 %v4128_v13 }
 0x460   :  { %v1500_v39 = vpop.f32.mrb[28].mxu0  ;;  %v1541_v43 = vpop.f32.mrb[20].mxu1 }
 0x461   :  { %v1501_v49 = vadd.f32 %v1500_v39, %v1326_v28  ;;  %v1502_v0 = vpop.f32.mrb[29].mxu0  ;;  %v3145_v59 = vpop.f32.mrb[21].mxu1  ;;  %v1542_v4 = vadd.f32 %v1541_v43, %v1334_v9  ;;  %v3366_v28 = vld [vmem:[#allocation8 + $0x38] ss:$12 sps:$4 sm:$0xff]   ;;  %v3368_v39 = vld [vmem:[#allocation8 + $0x68] ss:$12 sps:$4 sm:$0xff]  }
 0x462   :  { %v1503_v51 = vadd.f32 %v1502_v0, %v1330_v35  ;;  %v1504_v14 = vpop.f32.mrb[30].mxu0  ;;  %v1544_v23 = vpop.f32.mrb[22].mxu1  ;;  %v3367_v35 = vld [vmem:[#allocation8 + $0x50] ss:$12 sps:$4 sm:$0xff]   ;;  %v3369_v43 = vld [vmem:[#allocation8 + $0x80] ss:$12 sps:$4 sm:$0xff]  }
 0x463   :  { %v1547_v16 = vadd.f32 %v1501_v49, %v3763_v20  ;;  %v1505_v19 = vpop.f32.mrb[31].mxu0  ;;  %v3146_v55 = vpop.f32.mrb[23].mxu1  ;;  %v3370_v49 = vld [vmem:[#allocation8 + $0x98] ss:$12 sps:$4 sm:$0xff]   ;;  %v3371_v0 = vld [vmem:[#allocation8 + $0xb0] ss:$12 sps:$4 sm:$0xff]  }
 0x464   :  { %v1554_v58 = vadd.f32 %v1503_v51, %v3768_v25  ;;  %v1605_v59 = vld [vmem:[%s4118_s4] sm:$0x7] }
 0x465   :  { %v2853_v15 = vmul.f32 -1.442695, %v1547_v16  ;;  %v1610_v51 = vrot.slane %v1605_v59, %v3741_v1  ;;  %v1614_v14 = vrot.slane %v1605_v59, %v3746_v3 }
 0x466   :  { %v2854_v60 = vmul.f32 -1.442695, %v1554_v58 }
 0x467   :  { %3418 = vpow2.f32 %v2853_v15 }
 0x468   :  { %3420 = vpow2.f32 %v2854_v60 }
 0x471   :  { %v3419_v17 = vpop.eup %3418 }
 0x472   :  { %v1551_v24 = vadd.f32 1.0, %v3419_v17  ;;  %v3421_v62 = vpop.eup %3420 }
 0x473   :  { %v1558_v12 = vadd.f32 1.0, %v3421_v62 }
 0x474   :  { %3422 = vrcp.f32 %v1551_v24 }
 0x475   :  { %3424 = vrcp.f32 %v1558_v12 }
 0x47e   :  { %v3423_v2 = vpop.eup %3422 }
 0x47f   :  { %v1561_v29 = vmul.f32 %v3423_v2, %v1542_v4  ;;  %v3425_v33 = vpop.eup %3424 }
 0x480   :  { %v1564_v25 = vsub.f32 1.0, %v3425_v33  ;;  %v1566_v50 = vmul.f32 %v3425_v33, %v3894_v10  ;;  %v3365_v10 = vld [vmem:[#allocation8 + $0x20] ss:$12 sps:$4 sm:$0xff]  }
 0x481   :  { %v1562_v20 = vadd.f32 %v1561_v29, %v3771_v31  ;;  %v3364_v31 = vld [vmem:[#allocation8 + $0x8] ss:$12 sps:$4 sm:$0xff]  }
 0x483   :  { %3426 = vtanh.f32 %v1562_v20 }
 0x48d   :  { %v3427_v40 = vpop.eup %3426 }
 0x48e   :  { %v1565_v45 = vmul.f32 %v3427_v40, %v1564_v25  ;;  %v1618_v25 = vrot.slane %v1605_v59, %v3752_v11  ;;  %v3376_v59 = vld [vmem:[#allocation8 + $0x68] ss:$12 sps:$4 sm:$0xff]  }
 0x490   :  { %v3969_v5 = vadd.f32 %v1566_v50, %v1565_v45 }
 0x492   :  { %1568 = vst [vmem:[#allocation9 + $0x18] sm:$0xff] %v3969_v5  ;;  %v1604_v21 = vpack.c.bf16 %v3969_v5, %v3969_v5 }
 0x494   :  { %1783 = vmatmul.mubr.bf16.vlgmr.msra.gmra.mrb[32].mxu0 %v1604_v21  ;;  %3164 = vmatmul.mubr.bf16.vlgmr.msra.gmra.mrb[24].mxu1 %v1604_v21 }
 0x495   :  { %2035 = vmatpush1.bf16.msra.mxu0 %v3904_v18  ;;  %2066 = vmatprep.mubr.bf16.mxu0 %v4127_v38 }
 0x496   :  { %2036 = vmatprep.subr.bf16.mxu0 %v3908_v6  ;;  %3183 = vmatprep.mubr.msk.bf16.mxu1 %vm3571_vm0, %v4128_v13 }
 0x497   :  { %3168 = vmatpush3.bf16.msra.mxu1 %v3364_v31 }
 0x498   :  { %3169 = vmatprep.subr.bf16.mxu1 %v4128_v13 }
 0x499   :  { %2037 = vmatpush1.bf16.msra.mxu0 %v3911_v7 }
 0x49a   :  { %2038 = vmatprep.subr.bf16.mxu0 %v3915_v26 }
 0x49b   :  { %3170 = vmatpush3.bf16.msra.mxu1 %v3365_v10 }
 0x49c   :  { %3171 = vmatprep.subr.bf16.mxu1 %v4128_v13 }
 0x49d   :  { %2039 = vmatpush1.bf16.msra.mxu0 %v3918_v27 }
 0x49e   :  { %2040 = vmatprep.subr.bf16.mxu0 %v3922_v30 }
 0x49f   :  { %3172 = vmatpush3.bf16.msra.mxu1 %v3366_v28 }
 0x4a0   :  { %3173 = vmatprep.subr.bf16.mxu1 %v4128_v13 }
 0x4a1   :  { %2041 = vmatpush1.bf16.msra.mxu0 %v3925_v32 }
 0x4a2   :  { %2042 = vmatprep.subr.bf16.mxu0 %v3929_v34 }
 0x4a3   :  { %3174 = vmatpush3.bf16.msra.mxu1 %v3367_v35 }
 0x4a4   :  { %3175 = vmatprep.subr.bf16.mxu1 %v4128_v13 }
 0x4a5   :  { %2043 = vmatpush1.bf16.msra.mxu0 %v3932_v37 }
 0x4a6   :  { %2044 = vmatprep.subr.bf16.mxu0 %v3935_v41 }
 0x4a7   :  { %3176 = vmatpush3.bf16.msra.mxu1 %v3368_v39 }
 0x4a8   :  { %3177 = vmatprep.subr.bf16.mxu1 %v4128_v13 }
 0x4a9   :  { %2045 = vmatpush1.bf16.msra.mxu0 %v3938_v44 }
 0x4aa   :  { %2046 = vmatprep.subr.bf16.mxu0 %v3942_v47 }
 0x4ab   :  { %3178 = vmatpush3.bf16.msra.mxu1 %v3369_v43 }
 0x4ac   :  { %3179 = vmatprep.subr.bf16.mxu1 %v4128_v13 }
 0x4ad   :  { %2047 = vmatpush1.bf16.msra.mxu0 %v3945_v48 }
 0x4ae   :  { %2048 = vmatprep.subr.bf16.mxu0 %v3949_v36 }
 0x4af   :  { %3180 = vmatpush3.bf16.msra.mxu1 %v3370_v49  ;;  %v3374_v49 = vld [vmem:[#allocation8 + $0x38] ss:$12 sps:$4 sm:$0xff]  }
 0x4b0   :  { %3181 = vmatprep.subr.bf16.mxu1 %v4128_v13 }
 0x4b1   :  { %2049 = vmatpush1.bf16.msra.mxu0 %v3952_v53 }
 0x4b2   :  { %2318 = vmatprep.subr.bf16.mxu0 %v3902_v22 }
 0x4b3   :  { %3182 = vmatpush3.bf16.msra.mxu1 %v3371_v0  ;;  %v3375_v0 = vld [vmem:[#allocation8 + $0x50] ss:$12 sps:$4 sm:$0xff]  }
 0x4b4   :  { %3187 = vmatprep.subr.bf16.mxu1 %v4128_v13 }
 0x567   :  { %v1784_v23 = vpop.f32.mrb[32].mxu0  ;;  %v1825_v16 = vpop.f32.mrb[24].mxu1 }
 0x568   :  { %v1785_v19 = vadd.f32 %v1784_v23, %v1610_v51  ;;  %v1786_v55 = vpop.f32.mrb[33].mxu0  ;;  %v3165_v58 = vpop.f32.mrb[25].mxu1  ;;  %v1826_v45 = vadd.f32 %v1825_v16, %v1618_v25  ;;  %v3377_v51 = vld [vmem:[#allocation8 + $0x80] ss:$12 sps:$4 sm:$0xff]  }
 0x569   :  { %v1787_v15 = vadd.f32 %v1786_v55, %v1614_v14  ;;  %v1788_v60 = vpop.f32.mrb[34].mxu0  ;;  %v1828_v17 = vpop.f32.mrb[26].mxu1  ;;  %v3379_v14 = vld [vmem:[#allocation8 + $0xb0] ss:$12 sps:$4 sm:$0xff]   ;;  %v1889_v23 = vld [vmem:[%s4118_s4] sm:$0x7] }
 0x56a   :  { %v1831_v24 = vadd.f32 %v1785_v19, %v3776_v42  ;;  %v1789_v62 = vpop.f32.mrb[35].mxu0  ;;  %v3166_v9 = vpop.f32.mrb[27].mxu1  ;;  %v1894_v16 = vrot.slane %v1889_v23, %v3741_v1  ;;  %v1898_v19 = vrot.slane %v1889_v23, %v3746_v3 }
 0x56b   :  { %v1838_v12 = vadd.f32 %v1787_v15, %v3778_v46 }
 0x56c   :  { %v2879_v4 = vmul.f32 -1.442695, %v1831_v24 }
 0x56d   :  { %v2880_v2 = vmul.f32 -1.442695, %v1838_v12 }
 0x56e   :  { %3428 = vpow2.f32 %v2879_v4 }
 0x56f   :  { %3430 = vpow2.f32 %v2880_v2 }
 0x578   :  { %v3429_v29 = vpop.eup %3428 }
 0x579   :  { %v1835_v20 = vadd.f32 1.0, %v3429_v29  ;;  %v3431_v33 = vpop.eup %3430 }
 0x57a   :  { %v1842_v40 = vadd.f32 1.0, %v3431_v33 }
 0x57b   :  { %3432 = vrcp.f32 %v1835_v20 }
 0x57c   :  { %3434 = vrcp.f32 %v1842_v40 }
 0x585   :  { %v3433_v50 = vpop.eup %3432 }
 0x586   :  { %v1845_v21 = vmul.f32 %v3433_v50, %v1826_v45  ;;  %v3435_v31 = vpop.eup %3434  ;;  %v1902_v50 = vrot.slane %v1889_v23, %v3752_v11 }
 0x587   :  { %v1848_v46 = vsub.f32 1.0, %v3435_v31  ;;  %v1850_v35 = vmul.f32 %v3435_v31, %v3969_v5  ;;  %v3373_v5 = vld [vmem:[#allocation8 + $0x20] ss:$12 sps:$4 sm:$0xff]  }
 0x588   :  { %v1846_v42 = vadd.f32 %v1845_v21, %v3788_v57  ;;  %v3372_v57 = vld [vmem:[#allocation8 + $0x8] ss:$12 sps:$4 sm:$0xff]  }
 0x58a   :  { %3436 = vtanh.f32 %v1846_v42 }
 0x594   :  { %v3437_v10 = vpop.eup %3436 }
 0x595   :  { %v1849_v28 = vmul.f32 %v3437_v10, %v1848_v46 }
 0x597   :  { %v4011_v39 = vadd.f32 %v1850_v35, %v1849_v28 }
 0x599   :  { %1852 = vst [vmem:[#allocation9 + $0x20] sm:$0xff] %v4011_v39  ;;  %v1888_v43 = vpack.c.bf16 %v4011_v39, %v4011_v39 }
 0x59b   :  { %2067 = vmatmul.mubr.bf16.vlgmr.msra.gmra.mrb[36].mxu0 %v1888_v43  ;;  %3184 = vmatmul.mubr.bf16.vlgmr.msra.gmra.mrb[28].mxu1 %v1888_v43 }
 0x59c   :  { %2319 = vmatpush1.bf16.msra.mxu0 %v3904_v18  ;;  %2350 = vmatprep.mubr.bf16.mxu0 %v4127_v38 }
 0x59d   :  { %2320 = vmatprep.subr.bf16.mxu0 %v3908_v6  ;;  %3203 = vmatprep.mubr.msk.bf16.mxu1 %vm3571_vm0, %v4128_v13 }
 0x59e   :  { %3188 = vmatpush3.bf16.msra.mxu1 %v3372_v57 }
 0x59f   :  { %3189 = vmatprep.subr.bf16.mxu1 %v4128_v13 }
 0x5a0   :  { %2321 = vmatpush1.bf16.msra.mxu0 %v3911_v7 }
 0x5a1   :  { %2322 = vmatprep.subr.bf16.mxu0 %v3915_v26 }
 0x5a2   :  { %3190 = vmatpush3.bf16.msra.mxu1 %v3373_v5 }
 0x5a3   :  { %3191 = vmatprep.subr.bf16.mxu1 %v4128_v13 }
 0x5a4   :  { %2323 = vmatpush1.bf16.msra.mxu0 %v3918_v27 }
 0x5a5   :  { %2324 = vmatprep.subr.bf16.mxu0 %v3922_v30 }
 0x5a6   :  { %3192 = vmatpush3.bf16.msra.mxu1 %v3374_v49 }
 0x5a7   :  { %3193 = vmatprep.subr.bf16.mxu1 %v4128_v13 }
 0x5a8   :  { %2325 = vmatpush1.bf16.msra.mxu0 %v3925_v32 }
 0x5a9   :  { %2326 = vmatprep.subr.bf16.mxu0 %v3929_v34 }
 0x5aa   :  { %3194 = vmatpush3.bf16.msra.mxu1 %v3375_v0 }
 0x5ab   :  { %3195 = vmatprep.subr.bf16.mxu1 %v4128_v13 }
 0x5ac   :  { %2327 = vmatpush1.bf16.msra.mxu0 %v3932_v37 }
 0x5ad   :  { %2328 = vmatprep.subr.bf16.mxu0 %v3935_v41 }
 0x5ae   :  { %3196 = vmatpush3.bf16.msra.mxu1 %v3376_v59 }
 0x5af   :  { %3197 = vmatprep.subr.bf16.mxu1 %v4128_v13 }
 0x5b0   :  { %2329 = vmatpush1.bf16.msra.mxu0 %v3938_v44 }
 0x5b1   :  { %2330 = vmatprep.subr.bf16.mxu0 %v3942_v47 }
 0x5b2   :  { %3198 = vmatpush3.bf16.msra.mxu1 %v3377_v51 }
 0x5b3   :  { %3199 = vmatprep.subr.bf16.mxu1 %v4128_v13 }
 0x5b4   :  { %2331 = vmatpush1.bf16.msra.mxu0 %v3945_v48 }
 0x5b5   :  { %2332 = vmatprep.subr.bf16.mxu0 %v3949_v36 }
 0x5b8   :  { %2333 = vmatpush1.bf16.msra.mxu0 %v3952_v53 }
 0x5b9   :  { %2602 = vmatprep.subr.bf16.mxu0 %v3902_v22  ;;  %v3378_v22 = vld [vmem:[#allocation8 + $0x98] ss:$12 sps:$4 sm:$0xff]  }
 0x5ba   :  { %3200 = vmatpush3.bf16.msra.mxu1 %v3378_v22 }
 0x5bb   :  { %3201 = vmatprep.subr.bf16.mxu1 %v4128_v13 }
 0x5be   :  { %3202 = vmatpush3.bf16.msra.mxu1 %v3379_v14 }
 0x5bf   :  { %3207 = vmatprep.subr.bf16.mxu1 %v4128_v13 }
 0x66e   :  { %v2068_v55 = vpop.f32.mrb[36].mxu0  ;;  %v2109_v58 = vpop.f32.mrb[28].mxu1 }
 0x66f   :  { %v2069_v15 = vadd.f32 %v2068_v55, %v1894_v16  ;;  %v2070_v60 = vpop.f32.mrb[37].mxu0  ;;  %v3185_v17 = vpop.f32.mrb[29].mxu1  ;;  %v2110_v42 = vadd.f32 %v2109_v58, %v1902_v50 }
 0x670   :  { %v2071_v24 = vadd.f32 %v2070_v60, %v1898_v19  ;;  %v2072_v62 = vpop.f32.mrb[38].mxu0  ;;  %v2112_v9 = vpop.f32.mrb[30].mxu1 }
 0x671   :  { %v2115_v12 = vadd.f32 %v2069_v15, %v3780_v52  ;;  %v2073_v4 = vpop.f32.mrb[39].mxu0  ;;  %v3186_v2 = vpop.f32.mrb[31].mxu1 }
 0x672   :  { %v2122_v29 = vadd.f32 %v2071_v24, %v3785_v56 }
 0x673   :  { %v2905_v20 = vmul.f32 -1.442695, %v2115_v12 }
 0x674   :  { %v2906_v33 = vmul.f32 -1.442695, %v2122_v29  ;;  %v2457_v29 = vld [vmem:[%s4118_s4] sm:$0x7] }
 0x675   :  { %3438 = vpow2.f32 %v2905_v20  ;;  %v2462_v20 = vrot.slane %v2457_v29, %v3741_v1 }
 0x676   :  { %3440 = vpow2.f32 %v2906_v33 }
 0x67f   :  { %v3439_v25 = vpop.eup %3438 }
 0x680   :  { %v2119_v40 = vadd.f32 1.0, %v3439_v25  ;;  %v3441_v45 = vpop.eup %3440 }
 0x681   :  { %v2126_v21 = vadd.f32 1.0, %v3441_v45 }
 0x682   :  { %3442 = vrcp.f32 %v2119_v40 }
 0x683   :  { %3444 = vrcp.f32 %v2126_v21 }
 0x68c   :  { %v3443_v31 = vpop.eup %3442 }
 0x68d   :  { %v2129_v46 = vmul.f32 %v3443_v31, %v2110_v42  ;;  %v3445_v10 = vpop.eup %3444 }
 0x68e   :  { %v2132_v56 = vsub.f32 1.0, %v3445_v10  ;;  %v2134_v43 = vmul.f32 %v3445_v10, %v4011_v39 }
 0x68f   :  { %v2130_v52 = vadd.f32 %v2129_v46, %v3794_v61  ;;  %v3380_v61 = vld [vmem:[#allocation8 + $0x8] ss:$12 sps:$4 sm:$0xff]  }
 0x690   :  { %v4129_v46 = vld [vmem:[#allocation14_spill] sm:$0xff] }
 0x691   :  { %3446 = vtanh.f32 %v2130_v52 }
 0x69b   :  { %v3447_v28 = vpop.eup %3446 }
 0x69c   :  { %v2133_v35 = vmul.f32 %v3447_v28, %v2132_v56  ;;  %v4130_v28 = vld [vmem:[#allocation15_spill] sm:$0xff] }
 0x69e   :  { %v4053_v57 = vadd.f32 %v2134_v43, %v2133_v35 }
 0x6a0   :  { %2136 = vst [vmem:[#allocation9 + $0x28] sm:$0xff] %v4053_v57  ;;  %v2172_v5 = vpack.c.bf16 %v4053_v57, %v4053_v57 }
 0x6a2   :  { %2351 = vmatmul.mubr.bf16.vlgmr.msra.gmra.mrb[40].mxu0 %v2172_v5  ;;  %3204 = vmatmul.mubr.bf16.vlgmr.msra.gmra.mrb[32].mxu1 %v2172_v5 }
 0x6a3   :  { %2603 = vmatpush1.bf16.msra.mxu0 %v3904_v18  ;;  %2634 = vmatprep.mubr.bf16.mxu0 %v4127_v38  ;;  %v3381_v38 = vld [vmem:[#allocation8 + $0x20] ss:$12 sps:$4 sm:$0xff]   ;;  %v3382_v18 = vld [vmem:[#allocation8 + $0x38] ss:$12 sps:$4 sm:$0xff]  }
 0x6a4   :  { %2604 = vmatprep.subr.bf16.mxu0 %v3908_v6  ;;  %3223 = vmatprep.mubr.msk.bf16.mxu1 %vm3571_vm0, %v4128_v13  ;;  %v3383_v6 = vld [vmem:[#allocation8 + $0x50] ss:$12 sps:$4 sm:$0xff]  }
 0x6a5   :  { %3208 = vmatpush3.bf16.msra.mxu1 %v3380_v61  ;;  %v2470_v61 = vrot.slane %v2457_v29, %v3752_v11 }
 0x6a6   :  { %3209 = vmatprep.subr.bf16.mxu1 %v4128_v13 }
 0x6a7   :  { %2605 = vmatpush1.bf16.msra.mxu0 %v3911_v7  ;;  %v3384_v7 = vld [vmem:[#allocation8 + $0x68] ss:$12 sps:$4 sm:$0xff]  }
 0x6a8   :  { %2606 = vmatprep.subr.bf16.mxu0 %v3915_v26  ;;  %v3385_v26 = vld [vmem:[#allocation8 + $0x80] ss:$12 sps:$4 sm:$0xff]  }
 0x6a9   :  { %3210 = vmatpush3.bf16.msra.mxu1 %v3381_v38 }
 0x6aa   :  { %3211 = vmatprep.subr.bf16.mxu1 %v4128_v13 }
 0x6ab   :  { %2607 = vmatpush1.bf16.msra.mxu0 %v3918_v27  ;;  %v3386_v27 = vld [vmem:[#allocation8 + $0x98] ss:$12 sps:$4 sm:$0xff]  }
 0x6ac   :  { %2608 = vmatprep.subr.bf16.mxu0 %v3922_v30  ;;  %v3387_v30 = vld [vmem:[#allocation8 + $0xb0] ss:$12 sps:$4 sm:$0xff]  }
 0x6ad   :  { %3212 = vmatpush3.bf16.msra.mxu1 %v3382_v18 }
 0x6ae   :  { %3213 = vmatprep.subr.bf16.mxu1 %v4128_v13 }
 0x6af   :  { %2609 = vmatpush1.bf16.msra.mxu0 %v3925_v32  ;;  %v2173_v32 = vld [vmem:[%s4118_s4] sm:$0x7]  ;;  %s3572_s4 = smov [#allocation9]  }
 0x6b0   :  { %2610 = vmatprep.subr.bf16.mxu0 %v3929_v34  ;;  %v2178_v34 = vrot.slane %v2173_v32, %v3741_v1  ;;  %v2186_v55 = vrot.slane %v2173_v32, %v3752_v11  ;;  %s2710_s21 = sshll.u32 %s3572_s4, 4  ;;  %s2711_s21 = int_to_ptr.vmem [resolvable:$true] %s2710_s21 }
 0x6b1   :  { %3214 = vmatpush3.bf16.msra.mxu1 %v3383_v6  ;;  %s3534_s22 = scalar_lea.vmem %s2711_s21, 1024  ;;  %p3539_p11 = scmp.lt.s32.totalorder %s2711_s21, %s2711_s21 }
 0x6b2   :  { %3215 = vmatprep.subr.bf16.mxu1 %v4128_v13  ;;  %p3535_p10 = scmp.ne.s32.totalorder %s2711_s21, %s3534_s22  ;;  %p3540_p12 = scmp.lt.s32.totalorder %s3534_s22, %s3534_s22 }
 0x6b3   :  { %2611 = vmatpush1.bf16.msra.mxu0 %v3932_v37  ;;  %v2182_v37 = vrot.slane %v2173_v32, %v3746_v3 }
 0x6b4   :  { %2612 = vmatprep.subr.bf16.mxu0 %v3935_v41  ;;  %p3541_p13 = por %p3540_p12, %p3539_p11 }
 0x6b5   :  { %3216 = vmatpush3.bf16.msra.mxu1 %v3384_v7 }
 0x6b6   :  { %3217 = vmatprep.subr.bf16.mxu1 %v4128_v13  ;;  %p3542_p0 = pnand %p3541_p13, %p3535_p10 }
 0x6b7   :  { %2613 = vmatpush1.bf16.msra.mxu0 %v3938_v44 }
 0x6b8   :  { %2614 = vmatprep.subr.bf16.mxu0 %v3942_v47 }
 0x6b9   :  { %3218 = vmatpush3.bf16.msra.mxu1 %v3385_v26  ;;  %v4131_v26 = vld [vmem:[#allocation13_spill] sm:$0xff] }
 0x6ba   :  { %3219 = vmatprep.subr.bf16.mxu1 %v4128_v13 }
 0x6bb   :  { %2615 = vmatpush1.bf16.msra.mxu0 %v3945_v48 }
 0x6bc   :  { %2616 = vmatprep.subr.bf16.mxu0 %v3949_v36 }
 0x6bd   :  { %3220 = vmatpush3.bf16.msra.mxu1 %v3386_v27 }
 0x6be   :  { %3221 = vmatprep.subr.bf16.mxu1 %v4128_v13 }
 0x6bf   :  { %2617 = vmatpush1.bf16.msra.mxu0 %v3952_v53 }
 0x6c1   :  { %3222 = vmatpush3.bf16.msra.mxu1 %v3387_v30 }
 0x775   :  { %v2352_v41 = vpop.f32.mrb[40].mxu0  ;;  %v2393_v44 = vpop.f32.mrb[32].mxu1 }
 0x776   :  { %v2353_v47 = vadd.f32 %v2352_v41, %v2178_v34  ;;  %v2354_v48 = vpop.f32.mrb[41].mxu0  ;;  %v3205_v36 = vpop.f32.mrb[33].mxu1  ;;  %v2394_v15 = vadd.f32 %v2393_v44, %v2186_v55 }
 0x777   :  { %v2355_v53 = vadd.f32 %v2354_v48, %v2182_v37  ;;  %v2356_v39 = vpop.f32.mrb[42].mxu0  ;;  %v2396_v49 = vpop.f32.mrb[34].mxu1 }
 0x778   :  { %v2399_v0 = vadd.f32 %v2353_v47, %v3796_v63  ;;  %v2357_v13 = vpop.f32.mrb[43].mxu0  ;;  %v3206_v59 = vpop.f32.mrb[35].mxu1 }
 0x779   :  { %v2406_v51 = vadd.f32 %v2355_v53, %v3798_v8 }
 0x77a   :  { %v2931_v22 = vmul.f32 -1.442695, %v2399_v0 }
 0x77b   :  { %v2932_v14 = vmul.f32 -1.442695, %v2406_v51 }
 0x77c   :  { %3448 = vpow2.f32 %v2931_v22 }
 0x77d   :  { %3450 = vpow2.f32 %v2932_v14 }
 0x786   :  { %v3449_v23 = vpop.eup %3448 }
 0x787   :  { %v2403_v16 = vadd.f32 1.0, %v3449_v23  ;;  %v3451_v19 = vpop.eup %3450 }
 0x788   :  { %v2410_v58 = vadd.f32 1.0, %v3451_v19 }
 0x789   :  { %3452 = vrcp.f32 %v2403_v16 }
 0x78a   :  { %3454 = vrcp.f32 %v2410_v58 }
 0x793   :  { %v3453_v60 = vpop.eup %3452 }
 0x794   :  { %v2413_v17 = vmul.f32 %v3453_v60, %v2394_v15  ;;  %v3455_v24 = vpop.eup %3454 }
 0x795   :  { %v2416_v8 = vsub.f32 1.0, %v3455_v24  ;;  %v2418_v12 = vmul.f32 %v3455_v24, %v4053_v57 }
 0x796   :  { %v2414_v63 = vadd.f32 %v2413_v17, %v3783_v54  ;;  %v2466_v54 = vrot.slane %v2457_v29, %v3746_v3 }
 0x798   :  { %3456 = vtanh.f32 %v2414_v63 }
 0x7a2   :  { %v3457_v62 = vpop.eup %3456 }
 0x7a3   :  { %v2417_v9 = vmul.f32 %v3457_v62, %v2416_v8 }
 0x7a5   :  { %v2419_v4 = vadd.f32 %v2418_v12, %v2417_v9 }
 0x7a7   :  { %2420 = vst [vmem:[#allocation9 + $0x30] sm:$0xff] %v2419_v4  ;;  %v2456_v2 = vpack.c.bf16 %v2419_v4, %v2419_v4 }
 0x7a9   :  { %2635 = vmatmul.mubr.bf16.vlgmr.msra.gmra.mrb[44].mxu0 %v2456_v2  ;;  %3224 = vmatmul.mubr.bf16.vlgmr.msra.gmra.mrb[36].mxu1 %v2456_v2 }
 0x87c   :  { %v2636_v33 = vpop.f32.mrb[44].mxu0  ;;  %v2677_v25 = vpop.f32.mrb[36].mxu1 }
 0x87d   :  { %v2637_v40 = vadd.f32 %v2636_v33, %v2462_v20  ;;  %v2638_v45 = vpop.f32.mrb[45].mxu0  ;;  %v3225_v50 = vpop.f32.mrb[37].mxu1  ;;  %v2678_v18 = vadd.f32 %v2677_v25, %v2470_v61 }
 0x87e   :  { %v2639_v21 = vadd.f32 %v2638_v45, %v2466_v54  ;;  %v2640_v42 = vpop.f32.mrb[46].mxu0  ;;  %v2680_v31 = vpop.f32.mrb[38].mxu1 }
 0x87f   :  { %v2683_v52 = vadd.f32 %v2637_v40, %v4129_v46  ;;  %v2641_v10 = vpop.f32.mrb[47].mxu0  ;;  %v3226_v56 = vpop.f32.mrb[39].mxu1 }
 0x880   :  { %v2690_v35 = vadd.f32 %v2639_v21, %v4130_v28 }
 0x881   :  { %v2957_v43 = vmul.f32 -1.442695, %v2683_v52 }
 0x882   :  { %v2958_v57 = vmul.f32 -1.442695, %v2690_v35 }
 0x883   :  { %3458 = vpow2.f32 %v2957_v43 }
 0x884   :  { %3460 = vpow2.f32 %v2958_v57 }
 0x88d   :  { %v3459_v1 = vpop.eup %3458 }
 0x88e   :  { %v2687_v3 = vadd.f32 1.0, %v3459_v1  ;;  %v3461_v5 = vpop.eup %3460 }
 0x88f   :  { %v2694_v38 = vadd.f32 1.0, %v3461_v5 }
 0x890   :  { %3462 = vrcp.f32 %v2687_v3 }
 0x891   :  { %3464 = vrcp.f32 %v2694_v38 }
 0x89a   :  { %v3463_v6 = vpop.eup %3462 }
 0x89b   :  { %v2697_v7 = vmul.f32 %v3463_v6, %v2678_v18  ;;  %v3465_v30 = vpop.eup %3464 }
 0x89c   :  { %v2700_v32 = vsub.f32 1.0, %v3465_v30  ;;  %v2702_v41 = vmul.f32 %v3465_v30, %v2419_v4 }
 0x89d   :  { %v2698_v27 = vadd.f32 %v2697_v7, %v4131_v26 }
 0x89f   :  { %3466 = vtanh.f32 %v2698_v27 }
 0x8a9   :  { %v3467_v34 = vpop.eup %3466 }
 0x8aa   :  { %v2701_v37 = vmul.f32 %v3467_v34, %v2700_v32 }
 0x8ac   :  { %v2703_v44 = vadd.f32 %v2702_v41, %v2701_v37 }
 0x8ae   :  { %2704 = vst [vmem:[#allocation9 + $0x38] sm:$0xff] %v2703_v44 }
 0x8af   :  { %3545 = shalt.err (!%p3542_p0)
}
 0x8b0   :  { %s3546_s25 = scalar_lea.hbm %s4119_s5, 1024 }
 0x8b1   :  { %p3547_p1 = scmp.ne.s32.totalorder %s4119_s5, %s3546_s25  ;;  %p3550_p2 = scmp.lt.u32.totalorder %s3546_s25, %s4119_s5 }
 0x8b3   :  { %p3552_p3 = pnand %p3550_p2, %p3547_p1 }
 0x8b5   :  { %3555 = shalt.err (!%p3552_p3)
}
 0x8b6   :  { %s3573_s0 = smov 128   ;;  %s3574_s7 = smov 8  }
 0x8b7   :  { %2716 = dma.vmem_to_hbm [thread:$0]  %s2711_s21, 1024, %s4119_s5, [#allocation5], %s3573_s0, %s3573_s0, %s3574_s7  }
 0x8b8   :  { %3560 = dma.done.wait [#allocation5], 1024  }
 0x8b9   :  { %3561 = vsyncadd [#allocation5], 4294966272 }
 0x8ba   :  { %2720 = vsyncpa [#allocation4], 1 }
 0x8bb   :  { %2721 = vsyncpa [#allocation7], 1 }
 0x8bc   :  { %2722 = vsyncpa [#allocation5], 1 }

</bundles_post_ra>
